<compile_context>
chip_gen: v7x
topology: tpu7x:2x2x1
jax: 0.10.0
libtpu: 0.0.40
codegen_flags: <defaults>
</compile_context>

<pallas_src>
import functools

import jax
import jax.numpy as jnp
import numpy as np
from jax.experimental import pallas as pl
from jax.experimental.pallas import tpu as pltpu

_INV_SQRT2 = 0.7071067811865476      # 1/sqrt(2)  (exact erf GELU)
_SQRT_2_OVER_PI = 0.7978845608028654  # sqrt(2/pi) (tanh GELU)


# ----------------------------- Pallas kernel ------------------------------- #

def mlp_kernel(x_ref, w1_ref, b1_ref, w2_ref, b2_ref, out_ref, *, approx_gelu):
    """Fused Mlp on one row tile.

    x_ref  : (block_m, C_in)   bf16 (or f32)
    w1_ref : (C_in, H)         fc1 weight, pre-transposed to (in, out)
    b1_ref : (1, H)            f32
    w2_ref : (H, C_out)        fc2 weight, pre-transposed to (in, out)
    b2_ref : (1, C_out)        f32
    out_ref: (block_m, C_out)
    """
    x = x_ref[...]

    # fc1: MXU matmul, f32 accumulation regardless of operand dtype.
    h = jnp.dot(x, w1_ref[...], preferred_element_type=jnp.float32)
    h = h + b1_ref[...].astype(jnp.float32)

    if approx_gelu:
        # tanh form -> EUP slot (frees the VALU); slightly different numerics.
        a = 0.5 * h * (1.0 + jnp.tanh(_SQRT_2_OVER_PI * (h + 0.044715 * (h * h * h))))
    else:
        # exact erf form == torch.nn.GELU(approximate='none')
        a = 0.5 * h * (1.0 + jax.lax.erf(h * _INV_SQRT2))

    # dropout(p=0.0) / eval mode is identity -> nothing to do.
    # TODO(synk): training-mode dropout (p > 0) via pltpu.prng_random_bits is not
    # implemented; this kernel is the eval / p=0.0 forward.

    # fc2: cast activation back to the weight dtype (bf16-native MXU), f32 accumulate.
    a = a.astype(w2_ref.dtype)
    o = jnp.dot(a, w2_ref[...], preferred_element_type=jnp.float32)
    o = o + b2_ref[...].astype(jnp.float32)

    out_ref[...] = o.astype(out_ref.dtype)


# ------------------------------ JAX wrapper -------------------------------- #

def prepare_params(torch_params, *, dtype=jnp.bfloat16):
    """One-time weight prep (outside the per-call path).

    torch_params: PyTorch nn.Linear layout: w (out, in), b (out,).
    Returns pre-transposed (in, out) weights in `dtype` and f32 biases.
    """
    w1, b1 = torch_params["w1"], torch_params["b1"]
    w2, b2 = torch_params["w2"], torch_params["b2"]
    H, _ = w1.shape
    C_out = w2.shape[0]
    return {
        "w1_t": jnp.asarray(w1.T, dtype=dtype),               # (C_in, H)
        "b1": jnp.asarray(b1, dtype=jnp.float32).reshape(1, H),
        "w2_t": jnp.asarray(w2.T, dtype=dtype),               # (H, C_out)
        "b2": jnp.asarray(b2, dtype=jnp.float32).reshape(1, C_out),
    }


@functools.partial(jax.jit, static_argnames=("block_m", "approx_gelu"))
def mlp_forward(x, params, *, block_m=1024, approx_gelu=False):
    """x: (B, N, C_in) -> (B, N, C_out). Single fused pallas_call, row-tiled."""
    B, N, C_in = x.shape
    w1_t, b1 = params["w1_t"], params["b1"]    # (C_in, H), (1, H)
    w2_t, b2 = params["w2_t"], params["b2"]    # (H, C_out), (1, C_out)
    H = w1_t.shape[1]
    C_out = w2_t.shape[1]
    M = B * N

    # ---- choose the row tile (all static under jit) -------------------------
    # Target big tiles (HBM roofline), but keep >= 2 grid steps when M allows so
    # the "parallel" axis can shard across v7x's two TensorCores, and keep the
    # sublane dim a multiple of 8.
    bm = min(block_m, M)
    if M >= 2 * 128:
        bm = min(bm, max(128, ((M // 2) // 128) * 128))
    bm = max(8, (bm // 8) * 8)

    grid_m = pl.cdiv(M, bm)
    M_pad = grid_m * bm

    x2 = x.reshape(M, C_in)
    if M_pad != M:
        x2 = jnp.pad(x2, ((0, M_pad - M), (0, 0)))   # zero-pad ragged last tile

    itemsize = jnp.dtype(x.dtype).itemsize
    nbytes = lambda a: a.size * jnp.dtype(a.dtype).itemsize
    cost = pl.CostEstimate(
        flops=2 * M_pad * (C_in * H + H * C_out),
        transcendentals=M_pad * H,
        bytes_accessed=(nbytes(x2) + M_pad * C_out * itemsize
                        + nbytes(w1_t) + nbytes(w2_t) + nbytes(b1) + nbytes(b2)),
    )

    out = pl.pallas_call(
        functools.partial(mlp_kernel, approx_gelu=approx_gelu),
        out_shape=jax.ShapeDtypeStruct((M_pad, C_out), x.dtype),
        grid=(grid_m,),
        in_specs=[
            pl.BlockSpec((bm, C_in), lambda i: (i, 0)),    # x rows (streamed)
            pl.BlockSpec((C_in, H), lambda i: (0, 0)),     # W1^T (resident)
            pl.BlockSpec((1, H), lambda i: (0, 0)),        # b1
            pl.BlockSpec((H, C_out), lambda i: (0, 0)),    # W2^T (resident)
            pl.BlockSpec((1, C_out), lambda i: (0, 0)),    # b2
        ],
        out_specs=pl.BlockSpec((bm, C_out), lambda i: (i, 0)),
        compiler_params=pltpu.CompilerParams(
            dimension_semantics=("parallel",),             # megacore-shardable rows
            # NOTE: at ViT-sized widths on v7x (32 MiB scoped / 64 MiB physical
            # VMEM) raise vmem_limit_bytes and/or single-buffer the resident
            # weights and re-derive bm; unnecessary at these demo widths.
        ),
        cost_estimate=cost,
    )(x2, w1_t, b1, w2_t, b2)

    if M_pad != M:
        out = out[:M]
    return out.reshape(B, N, C_out)


# --------------------------- pure-JAX reference ----------------------------- #

def reference_forward(x, params):
    """f32 reference (PyTorch nn.Linear layout params)."""
    hp = jax.lax.Precision.HIGHEST
    h = jnp.einsum("bnc,hc->bnh", x, params["w1"], precision=hp) + params["b1"]
    a = 0.5 * h * (1.0 + jax.lax.erf(h * _INV_SQRT2))
    o = jnp.einsum("bnh,oh->bno", a, params["w2"], precision=hp) + params["b2"]
    return o


# ---------------------------------- main ------------------------------------ #

if __name__ == "__main__":
    # Small but lane-dense shapes: feature dims are multiples of 128 so stores are
    # unmasked and the MXU operands are full tiles. M = 512 -> block_m clamps to
    # 256, grid = 2 (keeps both v7x TensorCores busy).
    B, N = 2, 256
    C_IN, HIDDEN, C_OUT = 128, 256, 128

    key = jax.random.PRNGKey(0)
    kx, k1, k2, k3, k4 = jax.random.split(key, 5)

    x_f32 = jax.random.normal(kx, (B, N, C_IN), dtype=jnp.float32)
    torch_params = {
        # PyTorch nn.Linear layout: weight (out_features, in_features), bias (out,)
        "w1": jax.random.normal(k1, (HIDDEN, C_IN), dtype=jnp.float32) * 0.05,
        "b1": jax.random.normal(k2, (HIDDEN,), dtype=jnp.float32) * 0.05,
        "w2": jax.random.normal(k3, (C_OUT, HIDDEN), dtype=jnp.float32) * 0.05,
        "b2": jax.random.normal(k4, (C_OUT,), dtype=jnp.float32) * 0.05,
    }

    # bf16 I/O (memory-bound kernel): cast activations + weights once; the kernel
    # keeps f32 accumulation and f32 bias/GELU math.
    x = x_f32.astype(jnp.bfloat16)
    params = prepare_params(torch_params, dtype=jnp.bfloat16)

    out = mlp_forward(x, params)          # exact erf GELU (matches nn.GELU())
    out = jax.block_until_ready(out)

    # Reference: f32 math on the same bf16-quantized operands.
    ref_params = {
        "w1": torch_params["w1"].astype(jnp.bfloat16).astype(jnp.float32),
        "b1": torch_params["b1"],
        "w2": torch_params["w2"].astype(jnp.bfloat16).astype(jnp.float32),
        "b2": torch_params["b2"],
    }
    ref = reference_forward(x.astype(jnp.float32), ref_params)

    np.testing.assert_allclose(
        np.asarray(out.astype(jnp.float32)), np.asarray(ref), rtol=2e-2, atol=2e-2
    )

    print("KERNEL_OK")
</pallas_src>

<mosaic_0001>
module attributes {stable_mosaic.version = 11 : i64} {
  func.func @mlp_kernel(%arg0: i32, %arg1: memref<256x128xbf16, #tpu.memory_space<vmem>>, %arg2: memref<128x256xbf16, #tpu.memory_space<vmem>>, %arg3: memref<1x256xf32, #tpu.memory_space<vmem>>, %arg4: memref<256x128xbf16, #tpu.memory_space<vmem>>, %arg5: memref<1x128xf32, #tpu.memory_space<vmem>>, %arg6: memref<256x128xbf16, #tpu.memory_space<vmem>>) attributes {dimension_semantics = [#tpu.dimension_semantics<parallel>], iteration_bounds = array<i64: 2>, scalar_prefetch = 0 : i64, scratch_operands = 0 : i64, tpu.core_type = #tpu.core_type<tc>, window_params = [{transform_indices = @transform_0, window_bounds = array<i64: 256, 128>}, {pipeline_mode = #tpu.pipeline_mode<synchronous>, transform_indices = @transform_1, window_bounds = array<i64: 128, 256>}, {pipeline_mode = #tpu.pipeline_mode<synchronous>, transform_indices = @transform_2, window_bounds = array<i64: 1, 256>}, {pipeline_mode = #tpu.pipeline_mode<synchronous>, transform_indices = @transform_3, window_bounds = array<i64: 256, 128>}, {pipeline_mode = #tpu.pipeline_mode<synchronous>, transform_indices = @transform_4, window_bounds = array<i64: 1, 128>}, {transform_indices = @transform_5, window_bounds = array<i64: 256, 128>}]} {
    %c0 = arith.constant 0 : index
    %c0_0 = arith.constant 0 : index
    %0 = vector.load %arg1[%c0, %c0_0] : memref<256x128xbf16, #tpu.memory_space<vmem>>, vector<256x128xbf16>
    %c0_1 = arith.constant 0 : index
    %c0_2 = arith.constant 0 : index
    %1 = vector.load %arg2[%c0_1, %c0_2] : memref<128x256xbf16, #tpu.memory_space<vmem>>, vector<128x256xbf16>
    %cst = arith.constant dense<0.000000e+00> : vector<256x256xf32>
    %2 = tpu.matmul %0, %1, %cst {dimension_numbers = #tpu.dot_dimension_numbers<[1], [0], [0], [1], [0, 0, 1, 1], [], []>} : vector<256x128xbf16>, vector<128x256xbf16>, vector<256x256xf32> -> vector<256x256xf32>
    %c0_3 = arith.constant 0 : index
    %c0_4 = arith.constant 0 : index
    %3 = vector.load %arg3[%c0_3, %c0_4] : memref<1x256xf32, #tpu.memory_space<vmem>>, vector<1x256xf32>
    %4 = vector.broadcast %3 : vector<1x256xf32> to vector<256x256xf32>
    %5 = arith.addf %2, %4 : vector<256x256xf32>
    %cst_5 = arith.constant 5.000000e-01 : f32
    %6 = vector.broadcast %cst_5 : f32 to vector<256x256xf32>
    %7 = arith.mulf %6, %5 : vector<256x256xf32>
    %cst_6 = arith.constant 0.707106769 : f32
    %8 = vector.broadcast %cst_6 : f32 to vector<256x256xf32>
    %9 = arith.mulf %5, %8 : vector<256x256xf32>
    %10 = math.erf %9 : vector<256x256xf32>
    %cst_7 = arith.constant 1.000000e+00 : f32
    %11 = vector.broadcast %cst_7 : f32 to vector<256x256xf32>
    %12 = arith.addf %11, %10 : vector<256x256xf32>
    %13 = arith.mulf %7, %12 : vector<256x256xf32>
    %14 = arith.truncf %13 : vector<256x256xf32> to vector<256x256xbf16>
    %c0_8 = arith.constant 0 : index
    %c0_9 = arith.constant 0 : index
    %15 = vector.load %arg4[%c0_8, %c0_9] : memref<256x128xbf16, #tpu.memory_space<vmem>>, vector<256x128xbf16>
    %cst_10 = arith.constant dense<0.000000e+00> : vector<256x128xf32>
    %16 = tpu.matmul %14, %15, %cst_10 {dimension_numbers = #tpu.dot_dimension_numbers<[1], [0], [0], [1], [0, 0, 1, 1], [], []>} : vector<256x256xbf16>, vector<256x128xbf16>, vector<256x128xf32> -> vector<256x128xf32>
    %c0_11 = arith.constant 0 : index
    %c0_12 = arith.constant 0 : index
    %17 = vector.load %arg5[%c0_11, %c0_12] : memref<1x128xf32, #tpu.memory_space<vmem>>, vector<1x128xf32>
    %18 = vector.broadcast %17 : vector<1x128xf32> to vector<256x128xf32>
    %19 = arith.addf %16, %18 : vector<256x128xf32>
    %20 = arith.truncf %19 : vector<256x128xf32> to vector<256x128xbf16>
    %c0_13 = arith.constant 0 : index
    %c0_14 = arith.constant 0 : index
    %21 = vector.load %arg6[%c0_13, %c0_14] : memref<256x128xbf16, #tpu.memory_space<vmem>>, vector<256x128xbf16>
    tpu.vector_store %arg6[%c0_13, %c0_14], %20 {strides = array<i32>} : memref<256x128xbf16, #tpu.memory_space<vmem>>, vector<256x128xbf16>,
    return
  }
  func.func @transform_0(%arg0: i32) -> (i32, i32) {
    %c0_i32 = arith.constant 0 : i32
    %c0_i32_0 = arith.constant 0 : i32
    return %arg0, %c0_i32 : i32, i32
  }
  func.func @transform_1(%arg0: i32) -> (i32, i32) {
    %c0_i32 = arith.constant 0 : i32
    %c0_i32_0 = arith.constant 0 : i32
    %c0_i32_1 = arith.constant 0 : i32
    return %c0_i32, %c0_i32_0 : i32, i32
  }
  func.func @transform_2(%arg0: i32) -> (i32, i32) {
    %c0_i32 = arith.constant 0 : i32
    %c0_i32_0 = arith.constant 0 : i32
    %c0_i32_1 = arith.constant 0 : i32
    return %c0_i32, %c0_i32_0 : i32, i32
  }
  func.func @transform_3(%arg0: i32) -> (i32, i32) {
    %c0_i32 = arith.constant 0 : i32
    %c0_i32_0 = arith.constant 0 : i32
    %c0_i32_1 = arith.constant 0 : i32
    return %c0_i32, %c0_i32_0 : i32, i32
  }
  func.func @transform_4(%arg0: i32) -> (i32, i32) {
    %c0_i32 = arith.constant 0 : i32
    %c0_i32_0 = arith.constant 0 : i32
    %c0_i32_1 = arith.constant 0 : i32
    return %c0_i32, %c0_i32_0 : i32, i32
  }
  func.func @transform_5(%arg0: i32) -> (i32, i32) {
    %c0_i32 = arith.constant 0 : i32
    %c0_i32_0 = arith.constant 0 : i32
    return %arg0, %c0_i32 : i32, i32
  }
}

</mosaic_0001>

<bundles_post_ra>
// kernel: mlp_forward.1
= control target key start
LH: loop header
LB: loop body
LE: loop exit
PB: predicated region body
PF: predicated region fallthrough
CT: control target
= control target key end

     0   :  { %10 = vsyncpa [#allocation3], 0  ;;  %s3004_s0 = inlined_call_operand.hbm [shape: bf16[512,128], index: 0, kind: input, shape index: {}]   ;;  %s3005_s1 = inlined_call_operand.hbm [shape: bf16[128,256], index: 1, kind: input, shape index: {}]   ;;  %s3006_s2 = inlined_call_operand.vmem [shape: f32[1,256], index: 2, kind: input, shape index: {}]   ;;  %s3007_s3 = inlined_call_operand.hbm [shape: bf16[256,128], index: 3, kind: input, shape index: {}]   ;;  %s3008_s4 = inlined_call_operand.vmem [shape: f32[1,128], index: 4, kind: input, shape index: {}]   ;;  %s3009_s5 = inlined_call_operand.hbm [shape: bf16[512,128], index: 5, kind: output, shape index: {}]  }
   0x1   :  { %12 = vsyncpa [#allocation3 + $0x1], 0 }
   0x2   :  { %13 = vsyncpa [#allocation6], 0 }
   0x3   :  { %14 = vsyncpa [#allocation4], 0 }
   0x4   :  { %16 = vsyncpa [#allocation4 + $0x1], 0  ;;  %s2415_s18 = smov 0   ;;  %s2417_s19 = smov 0  }
   0x5   :  { %s2419_s20 = smov 0   ;;  %s2421_s21 = smov 0  }
   0x6 LB: > { %s2436_s22 = sadd.s32 4294967295, %s2372_s21   ;;  %s1618_s23 = sadd.s32 4294967294, %s2372_s21   ;;  %s2372_s21 = sphi %s2421_s21, %s3029_s21   ;;  %s2368_s20 = sphi %s2419_s20, %s3028_s20   ;;  %s2364_s19 = sphi %s2417_s19, %s3027_s19   ;;  %s2360_s18 = sphi %s2415_s18, %s3026_s18  }
   0x7   : > { %p42_p0 = scmp.ne.s32.totalorder %s2364_s19, %s2360_s18  ;;  %p3010_p1 = scmp.eq.s32.totalorder %s2436_s22, 0 }
   0x8   : > { %p156_p3 = scmp.eq.s32.totalorder %s1618_s23, 1  ;;  %p1619_p5 = scmp.ge.s32.totalorder %s2372_s21, 1 }
   0x9   : > { %p2445_p4 = por %p3010_p1, %p42_p0  ;;  %p163_p7 = scmp.lt.s32.totalorder %s2372_s21, 3 }
   0xa   : > { %p2450_p6 = por %p156_p3, %p42_p0  ;;  %s2374_s27 = smov [#allocation5]  }
   0xb   : > { %s3013_s24 = scalar_select %p2445_p4, 1, 0 }
   0xc   : > { %s3014_s25 = scalar_select %p2450_p6, 1, 0 }
   0xd   : > { %p2455_p8 = pnand %p1619_p5, %p163_p7  ;;  %s175_s28 = sshll.u32 %s2374_s27, 4  ;;  %s2459_s28 = int_to_ptr.vmem [resolvable:$true] %s175_s28 }
   0xe   : > { %s2375_s30 = smov [#allocation7]   ;;  %s2216_s9 = scalar_lea.hbm %s3005_s1, 2048 }
   0xf   : > { %p1970_p9 = pneg %p2455_p8  ;;  %s191_s6 = sshll.u32 %s2375_s30, 4  ;;  %s2470_s6 = int_to_ptr.vmem [resolvable:$true] %s191_s6 }
  0x10   : > { %p2217_p12 = scmp.ne.s32.totalorder %s3005_s1, %s2216_s9  ;;  %p2223_p5 = scmp.lt.u32.totalorder %s2216_s9, %s3005_s1 }
  0x11   : > { %p2466_p11 = pnand %p1970_p9, %p3010_p1 }
  0x13   : > { %p2218_p13 = pneg %p2466_p11 }
  0x15   : > { %p2219_p0 = pnand %p2218_p13, %p2217_p12 }
  0x17   : > { %p2220_p3 = pneg %p2219_p0 }
  0x19   : > { %p2225_p7 = pnand %p2223_p5, %p2220_p3 }
  0x1b   : > { %2228 = shalt.err (!%p2225_p7)
}
  0x1c   : > { %s2229_s14 = scalar_lea.vmem %s2459_s28, 2048  ;;  %p2237_p2 = scmp.lt.s32.totalorder %s2459_s28, %s2459_s28 }
  0x1d   : > { %p2230_p9 = scmp.ne.s32.totalorder %s2459_s28, %s2229_s14  ;;  %p2238_p12 = scmp.lt.s32.totalorder %s2229_s14, %s2229_s14 }
  0x1f   : > { %p2232_p10 = pnand %p2230_p9, %p2218_p13  ;;  %p2239_p0 = por %p2238_p12, %p2237_p2 }
  0x21   : > { %p2233_p1 = pneg %p2232_p10 }
  0x23   : > { %p2240_p6 = pnand %p2239_p0, %p2233_p1 }
  0x25   : > { %2243 = shalt.err (!%p2240_p6)
}
  0x26   : > { %s2376_s15 = smov 128   ;;  %s2377_s16 = smov 8  }
  0x27   : > { %1973 = dma.hbm_to_vmem [thread:$0]  (!%p2466_p11), %s3005_s1, 2048, %s2459_s28, [#allocation6], %s2376_s15, %s2376_s15, %s2377_s16  }
  0x28   : > { %s2244_s7 = scalar_lea.hbm %s3007_s3, 2048 }
  0x29   : > { %p2245_p2 = scmp.ne.s32.totalorder %s3007_s3, %s2244_s7  ;;  %p2251_p10 = scmp.lt.u32.totalorder %s2244_s7, %s3007_s3 }
  0x2b   : > { %p2247_p1 = pnand %p2245_p2, %p2218_p13 }
  0x2d   : > { %p2248_p6 = pneg %p2247_p1 }
  0x2f   : > { %p2253_p3 = pnand %p2251_p10, %p2248_p6 }
  0x31   : > { %2256 = shalt.err (!%p2253_p3)
}
  0x32   : > { %s2257_s28 = scalar_lea.vmem %s2470_s6, 2048  ;;  %p2265_p12 = scmp.lt.s32.totalorder %s2470_s6, %s2470_s6 }
  0x33   : > { %p2258_p5 = scmp.ne.s32.totalorder %s2470_s6, %s2257_s28  ;;  %p2266_p0 = scmp.lt.s32.totalorder %s2257_s28, %s2257_s28 }
  0x35   : > { %p2260_p7 = pnand %p2258_p5, %p2218_p13  ;;  %p2267_p2 = por %p2266_p0, %p2265_p12 }
  0x37   : > { %p2261_p9 = pneg %p2260_p7 }
  0x39   : > { %p2268_p1 = pnand %p2267_p2, %p2261_p9 }
  0x3b   : > { %2271 = shalt.err (!%p2268_p1)
}
  0x3c   : > { %s2378_s12 = smov 64   ;;  %s2379_s13 = smov 4  }
  0x3d   : > { %1976 = dma.hbm_to_vmem [thread:$0]  (!%p2466_p11), %s3007_s3, 2048, %s2470_s6, [#allocation6], %s2378_s12, %s2378_s12, %s2379_s13  }
  0x3e   : > { %s2528_s16 = sadd.s32 1, %s2372_s21   ;;  %s29_s23 = sadd.s32 1, %s2368_s20 }
  0x3f   : > { %s26_s17 = ssub.s32 %s2372_s21, %s2528_s16  ;;  %p36_p6 = scmp.ne.s32.totalorder %s2368_s20, %s2364_s19 }
  0x40   : > { %p27_p13 = scmp.eq.s32.totalorder %s26_s17, 0  ;;  %p37_p10 = scmp.eq.s32.totalorder %s2372_s21, 0 }
  0x41   : > { %p3017_p5 = scmp.eq.s32.totalorder %s2436_s22, 1  ;;  %p1987_p9 = scmp.lt.s32.totalorder %s2372_s21, 2 }
  0x42   : > { %s2537_s27 = scalar_select %p27_p13, %s2368_s20, %s29_s23  }
  0x43   : > { %p38_p3 = por %p37_p10, %p36_p6  ;;  %p2541_p7 = por %p3017_p5, %p36_p6 }
  0x44   : > { %s208_s30 = sand.u32 1, %s2368_s20   ;;  %s1717_s6 = sshll.u32 %s2372_s21, 11 }
  0x45   : > { %s3018_s29 = scalar_select %p2541_p7, 1, 0 }
  0x46   : > { %s1623_s7 = sshll.u32 %s208_s30, 7  ;;  %s2551_s10 = scalar_lea.hbm %s3004_s0, %s1717_s6 }
  0x47   : > { %s212_s11 = scalar_lea.vmem [#allocation2], %s1623_s7  ;;  %p2555_p11 = pnand %p1987_p9, %p38_p3 }
  0x48   : > { %s219_s28 = sshll.u32 %s212_s11, 4  ;;  %s2559_s15 = scalar_lea.sflag [#allocation3], %s208_s30  ;;  %s2553_s28 = int_to_ptr.vmem [resolvable:$true] %s219_s28 }
  0x49   : > { %s2272_s17 = scalar_lea.hbm %s2551_s10, 2048  ;;  %p2274_p0 = pneg %p2555_p11 }
  0x4a   : > { %p2273_p12 = scmp.ne.s32.totalorder %s2551_s10, %s2272_s17  ;;  %s2277_s6 = scalar_lea.hbm %s3004_s0, 4096 }
  0x4b   : > { %p2278_p13 = scmp.lt.u32.totalorder %s2551_s10, %s3004_s0  ;;  %p2279_p6 = scmp.lt.u32.totalorder %s2277_s6, %s2272_s17 }
  0x4c   : > { %p2275_p2 = pnand %p2274_p0, %p2273_p12  ;;  %p2281_p3 = scmp.lt.u32.totalorder %s2272_s17, %s2551_s10 }
  0x4d   : > { %p2280_p10 = por %p2279_p6, %p2278_p13 }
  0x4e   : > { %p2276_p1 = pneg %p2275_p2 }
  0x4f   : > { %p2282_p5 = por %p2281_p3, %p2280_p10 }
  0x51   : > { %p2283_p9 = pnand %p2282_p5, %p2276_p1 }
  0x53   : > { %2286 = shalt.err (!%p2283_p9)
}
  0x54   : > { %s2287_s30 = scalar_lea.vmem %s2553_s28, 2048  ;;  %s2380_s11 = smov [#allocation2]  }
  0x55   : > { %p2288_p12 = scmp.ne.s32.totalorder %s2553_s28, %s2287_s30  ;;  %s2292_s23 = sshll.u32 %s2380_s11, 4  ;;  %s2293_s23 = int_to_ptr.vmem [resolvable:$false] %s2292_s23 }
  0x56   : > { %s2294_s7 = scalar_lea.vmem %s2293_s23, 4096  ;;  %p2295_p4 = scmp.lt.s32.totalorder %s2553_s28, %s2293_s23 }
  0x57   : > { %p2290_p2 = pnand %p2288_p12, %p2274_p0  ;;  %p2296_p13 = scmp.lt.s32.totalorder %s2294_s7, %s2287_s30 }
  0x59   : > { %p2291_p7 = pneg %p2290_p2  ;;  %p2297_p6 = por %p2296_p13, %p2295_p4 }
  0x5b   : > { %p2298_p10 = pnand %p2297_p6, %p2291_p7 }
  0x5d   : > { %2301 = shalt.err (!%p2298_p10)
}
  0x5e   : > { %1980 = dma.hbm_to_vmem [thread:$0]  (!%p2555_p11), %s2551_s10, 2048, %s2553_s28, %s2559_s15, %s2378_s12, %s2378_s12, %s2379_s13  }
  0x5f   : > { %231 = sbr.rel (%p2455_p8) target bundleno = 732 (0x2dc), region = 40  ;;  %s2593_s17 = sand.u32 (!%p2455_p8), 1, %s2364_s19  }
  0x60   : > { %s1627_s6 = sshll.u32 (!%p2455_p8), %s2593_s17, 7  ;;  %s234_s8 = scalar_lea.sflag (!%p2455_p8), [#allocation3], %s2593_s17 }
  0x61   : > { %s2599_s14 = scalar_lea.vmem (!%p2455_p8), [#allocation2], %s1627_s6  ;;  %p3020_p4 = scmp.ne.s32.totalorder (!%p2455_p8), %s3013_s24, 0 }
  0x66   : > { %2347 = dma.done.wait (%p3020_p4), %s234_s8, 2048  }
  0x67   : > { %2349 = vsyncadd (%p3020_p4), %s234_s8, 4294965248  ;;  %p3021_p7 = scmp.eq.s32.totalorder %s2436_s22, 0 }
  0x69   : > { %2351 = dma.done.wait (%p3021_p7), [#allocation6], 4096   ;;  %p3022_p8 = pmov %p3021_p7 }
  0x6a   : > { %v2381_v0 = vmov 0   ;;  %v2032_v1 = vld [vmem:[#allocation5 + $0x4] ss:$8 sps:$4 sm:$0xff]   ;;  %v2034_v2 = vld [vmem:[#allocation5] ss:$8 sps:$4 sm:$0xff]   ;;  %v2058_v23 = vld [vmem:[%s2599_s14 + $0x10] sm:$0xff]   ;;  %v325_v49 = vlaneseq }
  0x6b   : > { %2353 = vsyncadd (%p3022_p8), [#allocation6], 4294963200  ;;  %543 = vmatprep.mubr.bf16.mxu0 %v2381_v0  ;;  %511 = vmatprep.subr.bf16.mxu0 %v2032_v1  ;;  %v2035_v3 = vld [vmem:[#allocation5 + $0x14] ss:$8 sps:$4 sm:$0xff]   ;;  %v2037_v4 = vld [vmem:[#allocation5 + $0x10] ss:$8 sps:$4 sm:$0xff]  }
  0x6c   : > { %512 = vmatpush1.bf16.msra.mxu0 %v2034_v2  ;;  %v2038_v5 = vld [vmem:[#allocation5 + $0x24] ss:$8 sps:$4 sm:$0xff]   ;;  %v2040_v6 = vld [vmem:[#allocation5 + $0x20] ss:$8 sps:$4 sm:$0xff]   ;;  %v2041_v7 = vld [vmem:[#allocation5 + $0x34] ss:$8 sps:$4 sm:$0xff]  }
  0x6d   : > { %513 = vmatprep.subr.bf16.mxu0 %v2035_v3  ;;  %v2043_v8 = vld [vmem:[#allocation5 + $0x30] ss:$8 sps:$4 sm:$0xff]   ;;  %v2044_v9 = vld [vmem:[#allocation5 + $0x44] ss:$8 sps:$4 sm:$0xff]   ;;  %v2046_v10 = vld [vmem:[#allocation5 + $0x40] ss:$8 sps:$4 sm:$0xff]  }
  0x6e   : > { %v2047_v11 = vld [vmem:[#allocation5 + $0x54] ss:$8 sps:$4 sm:$0xff]   ;;  %v2049_v12 = vld [vmem:[#allocation5 + $0x50] ss:$8 sps:$4 sm:$0xff]   ;;  %v2050_v13 = vld [vmem:[#allocation5 + $0x64] ss:$8 sps:$4 sm:$0xff]  }
  0x6f   : > { %v2052_v14 = vld [vmem:[#allocation5 + $0x60] ss:$8 sps:$4 sm:$0xff]   ;;  %v2053_v15 = vld [vmem:[#allocation5 + $0x74] ss:$8 sps:$4 sm:$0xff]   ;;  %v2055_v16 = vld [vmem:[#allocation5 + $0x70] ss:$8 sps:$4 sm:$0xff]  }
  0x70   : > { %514 = vmatpush1.bf16.msra.mxu0 %v2037_v4  ;;  %v2072_v17 = vld [vmem:[#allocation7 + $0x40] sm:$0xff]   ;;  %v2074_v19 = vld [vmem:[#allocation7 + $0x48] sm:$0xff]   ;;  %v2059_v24 = vld [vmem:[%s2599_s14 + $0x18] sm:$0xff]   ;;  %v326_v50 = vshrl.u32 %v325_v49, 7  ;;  %s2905_s10 = scalar_lea.vmem [#allocation8], %s1627_s6  ;;  %s1750_s28 = sshll.u32 %s2436_s22, 11 }
  0x71   : > { %515 = vmatprep.subr.bf16.mxu0 %v2038_v5  ;;  %v2073_v18 = vld [vmem:[#allocation7] sm:$0xff]   ;;  %1846 = vmatprep.subr.bf16.mxu1 %v2072_v17  ;;  %v2075_v21 = vld [vmem:[#allocation7 + $0x8] sm:$0xff]   ;;  %v2062_v27 = vld [vmem:[%s2599_s14 + $0x30] sm:$0xff]   ;;  %s1526_s15 = sshll.u32 %s2905_s10, 4  ;;  %s2957_s11 = scalar_lea.hbm %s3009_s5, %s1750_s28  ;;  %s2959_s15 = int_to_ptr.vmem [resolvable:$true] %s1526_s15 }
  0x72   : > { %v2056_v20 = vld [vmem:[%s2599_s14] sm:$0xff]   ;;  %1847 = vmatpush3.bf16.msra.mxu1 %v2073_v18  ;;  %v2057_v22 = vld [vmem:[%s2599_s14 + $0x8] sm:$0xff]   ;;  %v2063_v28 = vld [vmem:[%s2599_s14 + $0x38] sm:$0xff]   ;;  %v327_v51 = vsub.s32 0, %v326_v50  ;;  %v331_v53 = vsub.s32 1, %v326_v50  ;;  %s1513_s23 = scalar_lea.sflag [#allocation4], %s2593_s17 }
  0x73   : > { %1848 = vmatprep.subr.bf16.mxu1 %v2074_v19  ;;  %v2060_v25 = vld [vmem:[%s2599_s14 + $0x20] sm:$0xff]   ;;  %v2061_v26 = vld [vmem:[%s2599_s14 + $0x28] sm:$0xff]   ;;  %v2066_v31 = vld [vmem:[%s2599_s14 + $0x50] sm:$0xff]   ;;  %s2302_s7 = scalar_lea.vmem %s2959_s15, 2048  ;;  %p3023_p0 = scmp.ne.s32.totalorder %s3018_s29, 0 }
  0x74   : > { %516 = vmatpush1.bf16.msra.mxu0 %v2040_v6  ;;  %v2064_v29 = vld [vmem:[%s2599_s14 + $0x40] sm:$0xff]   ;;  %v2065_v30 = vld [vmem:[%s2599_s14 + $0x48] sm:$0xff]   ;;  %v2076_v32 = vld [vmem:[#allocation7 + $0x50] sm:$0xff]   ;;  %p2303_p11 = scmp.ne.s32.totalorder %s2959_s15, %s2302_s7  ;;  %s2382_s22 = smov [#allocation8]  }
  0x75   : > { %517 = vmatprep.subr.bf16.mxu0 %v2041_v7  ;;  %v2067_v33 = vld [vmem:[%s2599_s14 + $0x58] sm:$0xff]   ;;  %v2077_v34 = vld [vmem:[#allocation7 + $0x10] sm:$0xff]   ;;  %v2080_v37 = vld [vmem:[#allocation7 + $0x60] sm:$0xff]   ;;  %s2306_s6 = sshll.u32 %s2382_s22, 4  ;;  %s2307_s6 = int_to_ptr.vmem [resolvable:$false] %s2306_s6 }
  0x76   : > { %1849 = vmatpush3.bf16.msra.mxu1 %v2075_v21  ;;  %v2078_v35 = vld [vmem:[#allocation7 + $0x58] sm:$0xff]   ;;  %v2068_v38 = vld [vmem:[%s2599_s14 + $0x60] sm:$0xff]   ;;  %v2082_v40 = vld [vmem:[#allocation7 + $0x68] sm:$0xff]   ;;  %p2304_p1 = pnand %p2303_p11, %p3023_p0  ;;  %s2308_s8 = scalar_lea.vmem %s2307_s6, 4096 }
  0x77   : > { %1850 = vmatprep.subr.bf16.mxu1 %v2076_v32  ;;  %v2079_v36 = vld [vmem:[#allocation7 + $0x18] sm:$0xff]   ;;  %v2081_v39 = vld [vmem:[#allocation7 + $0x20] sm:$0xff]   ;;  %v2083_v41 = vld [vmem:[#allocation7 + $0x28] sm:$0xff]   ;;  %p2309_p5 = scmp.lt.s32.totalorder %s2959_s15, %s2307_s6  ;;  %p2310_p9 = scmp.lt.s32.totalorder %s2308_s8, %s2302_s7 }
  0x78   : > { %518 = vmatpush1.bf16.msra.mxu0 %v2043_v8  ;;  %v2084_v42 = vld [vmem:[#allocation7 + $0x70] sm:$0xff]   ;;  %v2069_v43 = vld [vmem:[%s2599_s14 + $0x68] sm:$0xff]   ;;  %v2086_v45 = vld [vmem:[#allocation7 + $0x78] sm:$0xff]   ;;  %p2305_p3 = pneg %p2304_p1 }
  0x79   : > { %519 = vmatprep.subr.bf16.mxu0 %v2044_v9  ;;  %v2085_v44 = vld [vmem:[#allocation7 + $0x30] sm:$0xff]   ;;  %v2087_v46 = vld [vmem:[#allocation7 + $0x38] sm:$0xff]   ;;  %v323_v52 = vld [vmem:[%s3006_s2] sm:$0x3]  ;;  %p2311_p12 = por %p2310_p9, %p2309_p5 }
  0x7a   : > { %1851 = vmatpush3.bf16.msra.mxu1 %v2077_v34  ;;  %v2070_v47 = vld [vmem:[%s2599_s14 + $0x70] sm:$0xff]   ;;  %v2071_v48 = vld [vmem:[%s2599_s14 + $0x78] sm:$0xff]   ;;  %v2644_v54 = vrot.slane %v323_v52, %v327_v51  ;;  %v2646_v55 = vrot.slane %v323_v52, %v331_v53 }
  0x7b   : > { %1852 = vmatprep.subr.bf16.mxu1 %v2078_v35  ;;  %p2312_p2 = pnand %p2311_p12, %p2305_p3 }
  0x7c   : > { %520 = vmatpush1.bf16.msra.mxu0 %v2046_v10 }
  0x7d   : > { %521 = vmatprep.subr.bf16.mxu0 %v2047_v11 }
  0x7e   : > { %1853 = vmatpush3.bf16.msra.mxu1 %v2079_v36 }
  0x7f   : > { %1854 = vmatprep.subr.bf16.mxu1 %v2080_v37 }
  0x80   : > { %522 = vmatpush1.bf16.msra.mxu0 %v2049_v12 }
  0x81   : > { %523 = vmatprep.subr.bf16.mxu0 %v2050_v13 }
  0x82   : > { %1855 = vmatpush3.bf16.msra.mxu1 %v2081_v39 }
  0x83   : > { %1856 = vmatprep.subr.bf16.mxu1 %v2082_v40 }
  0x84   : > { %524 = vmatpush1.bf16.msra.mxu0 %v2052_v14 }
  0x85   : > { %525 = vmatprep.subr.bf16.mxu0 %v2053_v15 }
  0x86   : > { %1857 = vmatpush3.bf16.msra.mxu1 %v2083_v41 }
  0x87   : > { %1858 = vmatprep.subr.bf16.mxu1 %v2084_v42 }
  0x88   : > { %526 = vmatpush1.bf16.msra.mxu0 %v2055_v16 }
  0x8a   : > { %1859 = vmatpush3.bf16.msra.mxu1 %v2085_v44 }
  0x8b   : > { %544 = vmatmul.mubr.bf16.vlgmr.msra.gmra.mrb[0].mxu0 %v2056_v20  ;;  %1860 = vmatprep.subr.bf16.mxu1 %v2086_v45 }
  0x8c   : > { %553 = vmatprep.mubr.bf16.mxu0 %v2381_v0 }
  0x8e   : > { %1861 = vmatpush3.bf16.msra.mxu1 %v2087_v46 }
  0x93   : > { %554 = vmatmul.mubr.bf16.gmra.mrb[4].mxu0 %v2057_v22 }
  0x94   : > { %563 = vmatprep.mubr.bf16.mxu0 %v2381_v0 }
  0x9b   : > { %564 = vmatmul.mubr.bf16.gmra.mrb[8].mxu0 %v2058_v23 }
  0x9c   : > { %573 = vmatprep.mubr.bf16.mxu0 %v2381_v0 }
  0xa3   : > { %574 = vmatmul.mubr.bf16.gmra.mrb[12].mxu0 %v2059_v24 }
  0xa4   : > { %583 = vmatprep.mubr.bf16.mxu0 %v2381_v0 }
  0xab   : > { %584 = vmatmul.mubr.bf16.gmra.mrb[16].mxu0 %v2060_v25 }
  0xac   : > { %593 = vmatprep.mubr.bf16.mxu0 %v2381_v0 }
  0xb3   : > { %594 = vmatmul.mubr.bf16.gmra.mrb[20].mxu0 %v2061_v26 }
  0xb4   : > { %603 = vmatprep.mubr.bf16.mxu0 %v2381_v0 }
  0xbb   : > { %604 = vmatmul.mubr.bf16.gmra.mrb[24].mxu0 %v2062_v27 }
  0xbc   : > { %613 = vmatprep.mubr.bf16.mxu0 %v2381_v0 }
  0xc3   : > { %614 = vmatmul.mubr.bf16.gmra.mrb[28].mxu0 %v2063_v28 }
  0xc4   : > { %623 = vmatprep.mubr.bf16.mxu0 %v2381_v0 }
  0xcb   : > { %624 = vmatmul.mubr.bf16.gmra.mrb[32].mxu0 %v2064_v29 }
  0xcc   : > { %633 = vmatprep.mubr.bf16.mxu0 %v2381_v0 }
  0xd3   : > { %634 = vmatmul.mubr.bf16.gmra.mrb[36].mxu0 %v2065_v30 }
  0xd4   : > { %643 = vmatprep.mubr.bf16.mxu0 %v2381_v0 }
  0xdb   : > { %644 = vmatmul.mubr.bf16.gmra.mrb[40].mxu0 %v2066_v31 }
  0xdc   : > { %653 = vmatprep.mubr.bf16.mxu0 %v2381_v0 }
  0xe3   : > { %654 = vmatmul.mubr.bf16.gmra.mrb[44].mxu0 %v2067_v33 }
  0xe4   : > { %663 = vmatprep.mubr.bf16.mxu0 %v2381_v0 }
  0xeb   : > { %664 = vmatmul.mubr.bf16.gmra.mrb[48].mxu0 %v2068_v38 }
  0xec   : > { %673 = vmatprep.mubr.bf16.mxu0 %v2381_v0 }
  0xf3   : > { %674 = vmatmul.mubr.bf16.gmra.mrb[52].mxu0 %v2069_v43 }
  0xf4   : > { %683 = vmatprep.mubr.bf16.mxu0 %v2381_v0 }
  0xfb   : > { %684 = vmatmul.mubr.bf16.gmra.mrb[56].mxu0 %v2070_v47 }
  0xfc   : > { %693 = vmatprep.mubr.bf16.mxu0 %v2381_v0 }
 0x103   : > { %694 = vmatmul.mubr.bf16.gmra.mrb[60].mxu0 %v2071_v48 }
 0x15e   : > { %v545_v56 = vpop.f32.mrb[0].mxu0 }
 0x15f   : > { %v546_v57 = vadd.f32 %v545_v56, %v2644_v54  ;;  %v547_v58 = vpop.f32.mrb[1].mxu0 }
 0x160   : > { %v548_v59 = vadd.f32 %v547_v58, %v2646_v55  ;;  %v549_v60 = vpop.f32.mrb[2].mxu0 }
 0x161   : > { %v768_v61 = vmul.f32 0.70710677, %v546_v57  ;;  %v550_v62 = vadd.f32 %v549_v60, %v2644_v54  ;;  %v551_v63 = vpop.f32.mrb[3].mxu0  ;;  %v704_v20 = vmul.f32 0.5, %v546_v57 }
 0x162   : > { %v769_v0 = vmul.f32 0.70710677, %v548_v59  ;;  %v552_v1 = vadd.f32 %v551_v63, %v2646_v55  ;;  %v705_v30 = vmul.f32 0.5, %v548_v59 }
 0x163   : > { %2088 = verf.f32 %v768_v61  ;;  %v770_v2 = vmul.f32 0.70710677, %v550_v62  ;;  %v706_v25 = vmul.f32 0.5, %v550_v62 }
 0x164   : > { %2090 = verf.f32 %v769_v0  ;;  %v771_v3 = vmul.f32 0.70710677, %v552_v1  ;;  %v707_v36 = vmul.f32 0.5, %v552_v1 }
 0x165   : > { %2092 = verf.f32 %v770_v2 }
 0x166   : > { %2094 = verf.f32 %v771_v3  ;;  %v555_v4 = vpop.f32.mrb[4].mxu0 }
 0x167   : > { %v556_v5 = vadd.f32 %v555_v4, %v2644_v54  ;;  %v557_v6 = vpop.f32.mrb[5].mxu0 }
 0x168   : > { %v558_v7 = vadd.f32 %v557_v6, %v2646_v55  ;;  %v559_v8 = vpop.f32.mrb[6].mxu0 }
 0x169   : > { %v772_v9 = vmul.f32 0.70710677, %v556_v5  ;;  %v560_v10 = vadd.f32 %v559_v8, %v2644_v54  ;;  %v561_v11 = vpop.f32.mrb[7].mxu0  ;;  %v708_v57 = vmul.f32 0.5, %v556_v5 }
 0x16a   : > { %v773_v12 = vmul.f32 0.70710677, %v558_v7  ;;  %v562_v13 = vadd.f32 %v561_v11, %v2646_v55  ;;  %v709_v62 = vmul.f32 0.5, %v558_v7 }
 0x16b   : > { %2096 = verf.f32 %v772_v9  ;;  %v774_v14 = vmul.f32 0.70710677, %v560_v10  ;;  %v710_v58 = vmul.f32 0.5, %v560_v10 }
 0x16c   : > { %2098 = verf.f32 %v773_v12  ;;  %v775_v15 = vmul.f32 0.70710677, %v562_v13  ;;  %v711_v63 = vmul.f32 0.5, %v562_v13 }
 0x16d   : > { %v2089_v16 = vpop.eup %2088  ;;  %2100 = verf.f32 %v774_v14 }
 0x16e   : > { %v2091_v17 = vpop.eup %2090  ;;  %2102 = verf.f32 %v775_v15  ;;  %v565_v18 = vpop.f32.mrb[8].mxu0  ;;  %v896_v21 = vadd.f32 1.0, %v2089_v16 }
 0x16f   : > { %v2093_v19 = vpop.eup %2092  ;;  %v2657_v22 = vadd.f32 %v565_v18, %v2644_v54  ;;  %v567_v23 = vpop.f32.mrb[9].mxu0  ;;  %v897_v29 = vadd.f32 1.0, %v2091_v17 }
 0x170   : > { %v2095_v24 = vpop.eup %2094  ;;  %v898_v26 = vadd.f32 1.0, %v2093_v19  ;;  %v2660_v27 = vadd.f32 %v567_v23, %v2646_v55  ;;  %v569_v28 = vpop.f32.mrb[10].mxu0  ;;  %v960_v39 = vmul.f32 %v896_v21, %v704_v20 }
 0x171   : > { %v776_v31 = vmul.f32 0.70710677, %v2657_v22  ;;  %v2664_v32 = vadd.f32 %v569_v28, %v2644_v54  ;;  %v571_v33 = vpop.f32.mrb[11].mxu0  ;;  %v899_v34 = vadd.f32 1.0, %v2095_v24  ;;  %v961_v42 = vmul.f32 %v897_v29, %v705_v30 }
 0x172   : > { %v962_v35 = vmul.f32 %v898_v26, %v706_v25  ;;  %v777_v37 = vmul.f32 0.70710677, %v2660_v27  ;;  %v2668_v38 = vadd.f32 %v571_v33, %v2646_v55  ;;  %v712_v24 = vmul.f32 0.5, %v2657_v22 }
 0x173   : > { %2104 = verf.f32 %v776_v31  ;;  %v778_v40 = vmul.f32 0.70710677, %v2664_v32  ;;  %v963_v43 = vmul.f32 %v899_v34, %v707_v36  ;;  %v714_v25 = vmul.f32 0.5, %v2664_v32 }
 0x174   : > { %2106 = verf.f32 %v777_v37  ;;  %v779_v41 = vmul.f32 0.70710677, %v2668_v38  ;;  %v1024_v45 = vpack.c.bf16 %v962_v35, %v960_v39  ;;  %v713_v30 = vmul.f32 0.5, %v2660_v27 }
 0x175   : > { %v2097_v44 = vpop.eup %2096  ;;  %2108 = verf.f32 %v778_v40  ;;  %v1025_v49 = vpack.c.bf16 %v963_v43, %v961_v42  ;;  %v715_v31 = vmul.f32 0.5, %v2668_v38 }
 0x176   : > { %v2099_v46 = vpop.eup %2098  ;;  %v900_v47 = vadd.f32 1.0, %v2097_v44  ;;  %2110 = verf.f32 %v779_v41  ;;  %v575_v48 = vpop.f32.mrb[12].mxu0 }
 0x177   : > { %v2101_v50 = vpop.eup %2100  ;;  %v901_v51 = vadd.f32 1.0, %v2099_v46  ;;  %v2673_v52 = vadd.f32 %v575_v48, %v2644_v54  ;;  %v577_v53 = vpop.f32.mrb[13].mxu0  ;;  %1223 = vmatprep.mubr.bf16.mxu1 %v1025_v49 }
 0x178   : > { %v2103_v56 = vpop.eup %2102  ;;  %v902_v59 = vadd.f32 1.0, %v2101_v50  ;;  %v2676_v60 = vadd.f32 %v577_v53, %v2646_v55  ;;  %v579_v61 = vpop.f32.mrb[14].mxu0  ;;  %1224 = vmatmul.mubr.bf16.vlgmr.msra.gmra.mrb[0].mxu1 %v1024_v45  ;;  %v964_v3 = vmul.f32 %v900_v47, %v708_v57 }
 0x179   : > { %v903_v0 = vadd.f32 1.0, %v2103_v56  ;;  %v780_v1 = vmul.f32 0.70710677, %v2673_v52  ;;  %v581_v2 = vpop.f32.mrb[15].mxu0  ;;  %v580_v5 = vadd.f32 %v579_v61, %v2644_v54  ;;  %v965_v8 = vmul.f32 %v901_v51, %v709_v62 }
 0x17a   : > { %v966_v4 = vmul.f32 %v902_v59, %v710_v58  ;;  %v781_v6 = vmul.f32 0.70710677, %v2676_v60  ;;  %v582_v10 = vadd.f32 %v581_v2, %v2646_v55  ;;  %v716_v51 = vmul.f32 0.5, %v2673_v52 }
 0x17b   : > { %v967_v9 = vmul.f32 %v903_v0, %v711_v63  ;;  %2112 = verf.f32 %v780_v1  ;;  %v782_v11 = vmul.f32 0.70710677, %v580_v5  ;;  %v717_v59 = vmul.f32 0.5, %v2676_v60 }
 0x17c   : > { %2114 = verf.f32 %v781_v6  ;;  %v1026_v7 = vpack.c.bf16 %v966_v4, %v964_v3  ;;  %v783_v13 = vmul.f32 0.70710677, %v582_v10  ;;  %v718_v61 = vmul.f32 0.5, %v580_v5 }
 0x17d   : > { %v2105_v12 = vpop.eup %2104  ;;  %v1027_v14 = vpack.c.bf16 %v967_v9, %v965_v8  ;;  %2116 = verf.f32 %v782_v11  ;;  %v719_v1 = vmul.f32 0.5, %v582_v10 }
 0x17e   : > { %v2107_v15 = vpop.eup %2106  ;;  %v904_v16 = vadd.f32 1.0, %v2105_v12  ;;  %v585_v17 = vpop.f32.mrb[16].mxu0  ;;  %2118 = verf.f32 %v783_v13 }
 0x17f   : > { %v2109_v18 = vpop.eup %2108  ;;  %v905_v19 = vadd.f32 1.0, %v2107_v15  ;;  %v2683_v20 = vadd.f32 %v585_v17, %v2644_v54  ;;  %v587_v21 = vpop.f32.mrb[17].mxu0  ;;  %1231 = vmatprep.mubr.bf16.mxu1 %v1027_v14 }
 0x180   : > { %v2111_v23 = vpop.eup %2110  ;;  %v906_v26 = vadd.f32 1.0, %v2109_v18  ;;  %v2688_v28 = vadd.f32 %v587_v21, %v2646_v55  ;;  %v589_v29 = vpop.f32.mrb[18].mxu0  ;;  %1232 = vmatmul.mubr.bf16.gmra.mrb[4].mxu1 %v1026_v7  ;;  %v968_v36 = vmul.f32 %v904_v16, %v712_v24 }
 0x181   : > { %v907_v33 = vadd.f32 1.0, %v2111_v23  ;;  %v784_v34 = vmul.f32 0.70710677, %v2683_v20  ;;  %v591_v35 = vpop.f32.mrb[19].mxu0  ;;  %v590_v32 = vadd.f32 %v589_v29, %v2644_v54  ;;  %v969_v39 = vmul.f32 %v905_v19, %v713_v30 }
 0x182   : > { %v970_v37 = vmul.f32 %v906_v26, %v714_v25  ;;  %v785_v22 = vmul.f32 0.70710677, %v2688_v28  ;;  %v592_v41 = vadd.f32 %v591_v35, %v2646_v55  ;;  %v720_v19 = vmul.f32 0.5, %v2683_v20 }
 0x183   : > { %v971_v40 = vmul.f32 %v907_v33, %v715_v31  ;;  %2120 = verf.f32 %v784_v34  ;;  %v786_v27 = vmul.f32 0.70710677, %v590_v32  ;;  %v721_v26 = vmul.f32 0.5, %v2688_v28 }
 0x184   : > { %2122 = verf.f32 %v785_v22  ;;  %v1028_v42 = vpack.c.bf16 %v970_v37, %v968_v36  ;;  %v787_v43 = vmul.f32 0.70710677, %v592_v41  ;;  %v722_v29 = vmul.f32 0.5, %v590_v32 }
 0x185   : > { %v2113_v38 = vpop.eup %2112  ;;  %v1029_v44 = vpack.c.bf16 %v971_v40, %v969_v39  ;;  %2124 = verf.f32 %v786_v27  ;;  %v723_v34 = vmul.f32 0.5, %v592_v41 }
 0x186   : > { %v2115_v45 = vpop.eup %2114  ;;  %v595_v46 = vpop.f32.mrb[20].mxu0  ;;  %v908_v47 = vadd.f32 1.0, %v2113_v38  ;;  %2126 = verf.f32 %v787_v43 }
 0x187   : > { %v2697_v48 = vadd.f32 %v595_v46, %v2644_v54  ;;  %v597_v49 = vpop.f32.mrb[21].mxu0  ;;  %1239 = vmatprep.mubr.bf16.mxu1 %v1029_v44  ;;  %v2117_v50 = vpop.eup %2116  ;;  %v909_v53 = vadd.f32 1.0, %v2115_v45 }
 0x188   : > { %v2701_v56 = vadd.f32 %v597_v49, %v2646_v55  ;;  %v599_v57 = vpop.f32.mrb[22].mxu0  ;;  %v2119_v58 = vpop.eup %2118  ;;  %v910_v62 = vadd.f32 1.0, %v2117_v50  ;;  %1240 = vmatmul.mubr.bf16.gmra.mrb[8].mxu1 %v1028_v42  ;;  %v972_v4 = vmul.f32 %v908_v47, %v716_v51 }
 0x189   : > { %v788_v63 = vmul.f32 0.70710677, %v2697_v48  ;;  %v601_v0 = vpop.f32.mrb[23].mxu0  ;;  %v911_v2 = vadd.f32 1.0, %v2119_v58  ;;  %v2707_v52 = vadd.f32 %v599_v57, %v2644_v54  ;;  %v973_v60 = vmul.f32 %v909_v53, %v717_v59 }
 0x18a   : > { %v789_v3 = vmul.f32 0.70710677, %v2701_v56  ;;  %v974_v6 = vmul.f32 %v910_v62, %v718_v61  ;;  %v2710_v8 = vadd.f32 %v601_v0, %v2646_v55  ;;  %v724_v50 = vmul.f32 0.5, %v2697_v48 }
 0x18b   : > { %2128 = verf.f32 %v788_v63  ;;  %v975_v5 = vmul.f32 %v911_v2, %v719_v1  ;;  %v790_v9 = vmul.f32 0.70710677, %v2707_v52  ;;  %v725_v59 = vmul.f32 0.5, %v2701_v56 }
 0x18c   : > { %2130 = verf.f32 %v789_v3  ;;  %v791_v10 = vmul.f32 0.70710677, %v2710_v8  ;;  %v1030_v7 = vpack.c.bf16 %v974_v6, %v972_v4  ;;  %v726_v61 = vmul.f32 0.5, %v2707_v52 }
 0x18d   : > { %v2121_v11 = vpop.eup %2120  ;;  %2132 = verf.f32 %v790_v9  ;;  %v1031_v14 = vpack.c.bf16 %v975_v5, %v973_v60  ;;  %v727_v1 = vmul.f32 0.5, %v2710_v8 }
 0x18e   : > { %v2123_v12 = vpop.eup %2122  ;;  %v605_v13 = vpop.f32.mrb[24].mxu0  ;;  %v912_v15 = vadd.f32 1.0, %v2121_v11  ;;  %2134 = verf.f32 %v791_v10 }
 0x18f   : > { %v2715_v16 = vadd.f32 %v605_v13, %v2644_v54  ;;  %v607_v17 = vpop.f32.mrb[25].mxu0  ;;  %v2125_v18 = vpop.eup %2124  ;;  %v913_v21 = vadd.f32 1.0, %v2123_v12  ;;  %1247 = vmatprep.mubr.bf16.mxu1 %v1031_v14 }
 0x190   : > { %v2719_v23 = vadd.f32 %v607_v17, %v2646_v55  ;;  %v609_v24 = vpop.f32.mrb[26].mxu0  ;;  %v2127_v25 = vpop.eup %2126  ;;  %v914_v30 = vadd.f32 1.0, %v2125_v18  ;;  %1248 = vmatmul.mubr.bf16.gmra.mrb[12].mxu1 %v1030_v7  ;;  %v976_v37 = vmul.f32 %v912_v15, %v720_v19 }
 0x191   : > { %v792_v31 = vmul.f32 0.70710677, %v2715_v16  ;;  %v611_v33 = vpop.f32.mrb[27].mxu0  ;;  %v915_v35 = vadd.f32 1.0, %v2127_v25  ;;  %v2725_v20 = vadd.f32 %v609_v24, %v2644_v54  ;;  %v977_v28 = vmul.f32 %v913_v21, %v721_v26 }
 0x192   : > { %v793_v36 = vmul.f32 0.70710677, %v2719_v23  ;;  %v978_v22 = vmul.f32 %v914_v30, %v722_v29  ;;  %v2728_v39 = vadd.f32 %v611_v33, %v2646_v55  ;;  %v728_v18 = vmul.f32 0.5, %v2715_v16 }
 0x193   : > { %2136 = verf.f32 %v792_v31  ;;  %v979_v32 = vmul.f32 %v915_v35, %v723_v34  ;;  %v794_v40 = vmul.f32 0.70710677, %v2725_v20  ;;  %v729_v26 = vmul.f32 0.5, %v2719_v23 }
 0x194   : > { %2138 = verf.f32 %v793_v36  ;;  %v795_v41 = vmul.f32 0.70710677, %v2728_v39  ;;  %v1032_v42 = vpack.c.bf16 %v978_v22, %v976_v37  ;;  %v730_v29 = vmul.f32 0.5, %v2725_v20 }
 0x195   : > { %v2129_v27 = vpop.eup %2128  ;;  %2140 = verf.f32 %v794_v40  ;;  %v1033_v44 = vpack.c.bf16 %v979_v32, %v977_v28  ;;  %v731_v34 = vmul.f32 0.5, %v2728_v39 }
 0x196   : > { %v2131_v38 = vpop.eup %2130  ;;  %v615_v43 = vpop.f32.mrb[28].mxu0  ;;  %v916_v45 = vadd.f32 1.0, %v2129_v27  ;;  %2142 = verf.f32 %v795_v41 }
 0x197   : > { %v2733_v46 = vadd.f32 %v615_v43, %v2644_v54  ;;  %v617_v47 = vpop.f32.mrb[29].mxu0  ;;  %v2133_v49 = vpop.eup %2132  ;;  %v917_v51 = vadd.f32 1.0, %v2131_v38  ;;  %1255 = vmatprep.mubr.bf16.mxu1 %v1033_v44 }
 0x198   : > { %v2737_v53 = vadd.f32 %v617_v47, %v2646_v55  ;;  %v619_v57 = vpop.f32.mrb[30].mxu0  ;;  %v2135_v58 = vpop.eup %2134  ;;  %v918_v62 = vadd.f32 1.0, %v2133_v49  ;;  %1256 = vmatmul.mubr.bf16.gmra.mrb[16].mxu1 %v1032_v42  ;;  %v980_v4 = vmul.f32 %v916_v45, %v724_v50 }
 0x199   : > { %v796_v63 = vmul.f32 0.70710677, %v2733_v46  ;;  %v621_v0 = vpop.f32.mrb[31].mxu0  ;;  %v919_v2 = vadd.f32 1.0, %v2135_v58  ;;  %v2745_v3 = vadd.f32 %v619_v57, %v2644_v54  ;;  %v981_v52 = vmul.f32 %v917_v51, %v725_v59 }
 0x19a   : > { %v797_v48 = vmul.f32 0.70710677, %v2737_v53  ;;  %v982_v6 = vmul.f32 %v918_v62, %v726_v61  ;;  %v2748_v56 = vadd.f32 %v621_v0, %v2646_v55  ;;  %v732_v49 = vmul.f32 0.5, %v2733_v46 }
 0x19b   : > { %2144 = verf.f32 %v796_v63  ;;  %v983_v60 = vmul.f32 %v919_v2, %v727_v1  ;;  %v798_v5 = vmul.f32 0.70710677, %v2745_v3  ;;  %v733_v59 = vmul.f32 0.5, %v2737_v53 }
 0x19c   : > { %2146 = verf.f32 %v797_v48  ;;  %v799_v8 = vmul.f32 0.70710677, %v2748_v56  ;;  %v1034_v11 = vpack.c.bf16 %v982_v6, %v980_v4  ;;  %v734_v61 = vmul.f32 0.5, %v2745_v3 }
 0x19d   : > { %v2137_v9 = vpop.eup %2136  ;;  %2148 = verf.f32 %v798_v5  ;;  %v1035_v12 = vpack.c.bf16 %v983_v60, %v981_v52  ;;  %v735_v1 = vmul.f32 0.5, %v2748_v56 }
 0x19e   : > { %v2139_v10 = vpop.eup %2138  ;;  %v625_v7 = vpop.f32.mrb[32].mxu0  ;;  %v920_v13 = vadd.f32 1.0, %v2137_v9  ;;  %2150 = verf.f32 %v799_v8 }
 0x19f   : > { %v2753_v14 = vadd.f32 %v625_v7, %v2644_v54  ;;  %v627_v15 = vpop.f32.mrb[33].mxu0  ;;  %v2141_v17 = vpop.eup %2140  ;;  %v921_v19 = vadd.f32 1.0, %v2139_v10  ;;  %1263 = vmatprep.mubr.bf16.mxu1 %v1035_v12 }
 0x1a0   : > { %v2757_v21 = vadd.f32 %v627_v15, %v2646_v55  ;;  %v629_v24 = vpop.f32.mrb[34].mxu0  ;;  %v2143_v25 = vpop.eup %2142  ;;  %v922_v30 = vadd.f32 1.0, %v2141_v17  ;;  %1264 = vmatmul.mubr.bf16.gmra.mrb[20].mxu1 %v1034_v11  ;;  %v984_v37 = vmul.f32 %v920_v13, %v728_v18 }
 0x1a1   : > { %v800_v31 = vmul.f32 0.70710677, %v2753_v14  ;;  %v631_v33 = vpop.f32.mrb[35].mxu0  ;;  %v923_v35 = vadd.f32 1.0, %v2143_v25  ;;  %v2765_v36 = vadd.f32 %v629_v24, %v2644_v54  ;;  %v985_v20 = vmul.f32 %v921_v19, %v729_v26 }
 0x1a2   : > { %v801_v16 = vmul.f32 0.70710677, %v2757_v21  ;;  %v986_v22 = vmul.f32 %v922_v30, %v730_v29  ;;  %v2768_v23 = vadd.f32 %v631_v33, %v2646_v55  ;;  %v736_v17 = vmul.f32 0.5, %v2753_v14 }
 0x1a3   : > { %2152 = verf.f32 %v800_v31  ;;  %v987_v28 = vmul.f32 %v923_v35, %v731_v34  ;;  %v802_v32 = vmul.f32 0.70710677, %v2765_v36  ;;  %v737_v26 = vmul.f32 0.5, %v2757_v21 }
 0x1a4   : > { %2154 = verf.f32 %v801_v16  ;;  %v803_v39 = vmul.f32 0.70710677, %v2768_v23  ;;  %v1036_v27 = vpack.c.bf16 %v986_v22, %v984_v37  ;;  %v738_v29 = vmul.f32 0.5, %v2765_v36 }
 0x1a5   : > { %v2145_v40 = vpop.eup %2144  ;;  %2156 = verf.f32 %v802_v32  ;;  %v1037_v38 = vpack.c.bf16 %v987_v28, %v985_v20  ;;  %v739_v34 = vmul.f32 0.5, %v2768_v23 }
 0x1a6   : > { %v2147_v41 = vpop.eup %2146  ;;  %v635_v42 = vpop.f32.mrb[36].mxu0  ;;  %v924_v43 = vadd.f32 1.0, %v2145_v40  ;;  %2158 = verf.f32 %v803_v39 }
 0x1a7   : > { %v2773_v44 = vadd.f32 %v635_v42, %v2644_v54  ;;  %v637_v45 = vpop.f32.mrb[37].mxu0  ;;  %v2149_v47 = vpop.eup %2148  ;;  %v925_v50 = vadd.f32 1.0, %v2147_v41  ;;  %1271 = vmatprep.mubr.bf16.mxu1 %v1037_v38 }
 0x1a8   : > { %v2777_v51 = vadd.f32 %v637_v45, %v2646_v55  ;;  %v639_v57 = vpop.f32.mrb[38].mxu0  ;;  %v2151_v58 = vpop.eup %2150  ;;  %v926_v62 = vadd.f32 1.0, %v2149_v47  ;;  %1272 = vmatmul.mubr.bf16.gmra.mrb[24].mxu1 %v1036_v27  ;;  %v988_v4 = vmul.f32 %v924_v43, %v732_v49 }
 0x1a9   : > { %v804_v63 = vmul.f32 0.70710677, %v2773_v44  ;;  %v641_v0 = vpop.f32.mrb[39].mxu0  ;;  %v927_v2 = vadd.f32 1.0, %v2151_v58  ;;  %v2785_v48 = vadd.f32 %v639_v57, %v2644_v54  ;;  %v989_v3 = vmul.f32 %v925_v50, %v733_v59 }
 0x1aa   : > { %v805_v46 = vmul.f32 0.70710677, %v2777_v51  ;;  %v990_v6 = vmul.f32 %v926_v62, %v734_v61  ;;  %v2788_v53 = vadd.f32 %v641_v0, %v2646_v55  ;;  %v740_v47 = vmul.f32 0.5, %v2773_v44 }
 0x1ab   : > { %2160 = verf.f32 %v804_v63  ;;  %v991_v52 = vmul.f32 %v927_v2, %v735_v1  ;;  %v806_v60 = vmul.f32 0.70710677, %v2785_v48  ;;  %v741_v59 = vmul.f32 0.5, %v2777_v51 }
 0x1ac   : > { %2162 = verf.f32 %v805_v46  ;;  %v807_v56 = vmul.f32 0.70710677, %v2788_v53  ;;  %v1038_v9 = vpack.c.bf16 %v990_v6, %v988_v4  ;;  %v742_v61 = vmul.f32 0.5, %v2785_v48 }
 0x1ad   : > { %v2153_v5 = vpop.eup %2152  ;;  %2164 = verf.f32 %v806_v60  ;;  %v1039_v10 = vpack.c.bf16 %v991_v52, %v989_v3  ;;  %v743_v1 = vmul.f32 0.5, %v2788_v53 }
 0x1ae   : > { %v2155_v8 = vpop.eup %2154  ;;  %v645_v11 = vpop.f32.mrb[40].mxu0  ;;  %v928_v7 = vadd.f32 1.0, %v2153_v5  ;;  %2166 = verf.f32 %v807_v56 }
 0x1af   : > { %v2793_v12 = vadd.f32 %v645_v11, %v2644_v54  ;;  %v647_v13 = vpop.f32.mrb[41].mxu0  ;;  %v2157_v15 = vpop.eup %2156  ;;  %v929_v18 = vadd.f32 1.0, %v2155_v8  ;;  %1279 = vmatprep.mubr.bf16.mxu1 %v1039_v10 }
 0x1b0   : > { %v2797_v19 = vadd.f32 %v647_v13, %v2646_v55  ;;  %v649_v24 = vpop.f32.mrb[42].mxu0  ;;  %v2159_v25 = vpop.eup %2158  ;;  %v930_v30 = vadd.f32 1.0, %v2157_v15  ;;  %1280 = vmatmul.mubr.bf16.gmra.mrb[28].mxu1 %v1038_v9  ;;  %v992_v37 = vmul.f32 %v928_v7, %v736_v17 }
 0x1b1   : > { %v808_v31 = vmul.f32 0.70710677, %v2793_v12  ;;  %v651_v33 = vpop.f32.mrb[43].mxu0  ;;  %v931_v35 = vadd.f32 1.0, %v2159_v25  ;;  %v2805_v16 = vadd.f32 %v649_v24, %v2644_v54  ;;  %v993_v36 = vmul.f32 %v929_v18, %v737_v26 }
 0x1b2   : > { %v809_v14 = vmul.f32 0.70710677, %v2797_v19  ;;  %v994_v22 = vmul.f32 %v930_v30, %v738_v29  ;;  %v2808_v21 = vadd.f32 %v651_v33, %v2646_v55  ;;  %v744_v15 = vmul.f32 0.5, %v2793_v12 }
 0x1b3   : > { %2168 = verf.f32 %v808_v31  ;;  %v995_v20 = vmul.f32 %v931_v35, %v739_v34  ;;  %v810_v28 = vmul.f32 0.70710677, %v2805_v16  ;;  %v745_v26 = vmul.f32 0.5, %v2797_v19 }
 0x1b4   : > { %2170 = verf.f32 %v809_v14  ;;  %v811_v23 = vmul.f32 0.70710677, %v2808_v21  ;;  %v1040_v40 = vpack.c.bf16 %v994_v22, %v992_v37  ;;  %v746_v29 = vmul.f32 0.5, %v2805_v16 }
 0x1b5   : > { %v2161_v32 = vpop.eup %2160  ;;  %2172 = verf.f32 %v810_v28  ;;  %v1041_v41 = vpack.c.bf16 %v995_v20, %v993_v36  ;;  %v747_v34 = vmul.f32 0.5, %v2808_v21 }
 0x1b6   : > { %v2163_v39 = vpop.eup %2162  ;;  %v655_v27 = vpop.f32.mrb[44].mxu0  ;;  %v932_v42 = vadd.f32 1.0, %v2161_v32  ;;  %2174 = verf.f32 %v811_v23 }
 0x1b7   : > { %v2813_v38 = vadd.f32 %v655_v27, %v2644_v54  ;;  %v657_v43 = vpop.f32.mrb[45].mxu0  ;;  %v2165_v45 = vpop.eup %2164  ;;  %v933_v49 = vadd.f32 1.0, %v2163_v39  ;;  %1287 = vmatprep.mubr.bf16.mxu1 %v1041_v41 }
 0x1b8   : > { %v2817_v50 = vadd.f32 %v657_v43, %v2646_v55  ;;  %v659_v57 = vpop.f32.mrb[46].mxu0  ;;  %v2167_v58 = vpop.eup %2166  ;;  %v934_v62 = vadd.f32 1.0, %v2165_v45  ;;  %1288 = vmatmul.mubr.bf16.gmra.mrb[32].mxu1 %v1040_v40  ;;  %v996_v4 = vmul.f32 %v932_v42, %v740_v47 }
 0x1b9   : > { %v812_v63 = vmul.f32 0.70710677, %v2813_v38  ;;  %v661_v0 = vpop.f32.mrb[47].mxu0  ;;  %v935_v2 = vadd.f32 1.0, %v2167_v58  ;;  %v2825_v46 = vadd.f32 %v659_v57, %v2644_v54  ;;  %v997_v48 = vmul.f32 %v933_v49, %v741_v59 }
 0x1ba   : > { %v813_v44 = vmul.f32 0.70710677, %v2817_v50  ;;  %v998_v6 = vmul.f32 %v934_v62, %v742_v61  ;;  %v2828_v51 = vadd.f32 %v661_v0, %v2646_v55  ;;  %v748_v45 = vmul.f32 0.5, %v2813_v38 }
 0x1bb   : > { %2176 = verf.f32 %v812_v63  ;;  %v999_v3 = vmul.f32 %v935_v2, %v743_v1  ;;  %v814_v52 = vmul.f32 0.70710677, %v2825_v46  ;;  %v749_v59 = vmul.f32 0.5, %v2817_v50 }
 0x1bc   : > { %2178 = verf.f32 %v813_v44  ;;  %v815_v53 = vmul.f32 0.70710677, %v2828_v51  ;;  %v1042_v5 = vpack.c.bf16 %v998_v6, %v996_v4  ;;  %v750_v61 = vmul.f32 0.5, %v2825_v46 }
 0x1bd   : > { %v2169_v60 = vpop.eup %2168  ;;  %2180 = verf.f32 %v814_v52  ;;  %v1043_v8 = vpack.c.bf16 %v999_v3, %v997_v48  ;;  %v751_v1 = vmul.f32 0.5, %v2828_v51 }
 0x1be   : > { %v2171_v56 = vpop.eup %2170  ;;  %v665_v9 = vpop.f32.mrb[48].mxu0  ;;  %v936_v11 = vadd.f32 1.0, %v2169_v60  ;;  %2182 = verf.f32 %v815_v53 }
 0x1bf   : > { %v2833_v10 = vadd.f32 %v665_v9, %v2644_v54  ;;  %v667_v7 = vpop.f32.mrb[49].mxu0  ;;  %v2173_v13 = vpop.eup %2172  ;;  %v937_v17 = vadd.f32 1.0, %v2171_v56  ;;  %1295 = vmatprep.mubr.bf16.mxu1 %v1043_v8 }
 0x1c0   : > { %v2837_v18 = vadd.f32 %v667_v7, %v2646_v55  ;;  %v669_v24 = vpop.f32.mrb[50].mxu0  ;;  %v2175_v25 = vpop.eup %2174  ;;  %v938_v30 = vadd.f32 1.0, %v2173_v13  ;;  %1296 = vmatmul.mubr.bf16.gmra.mrb[36].mxu1 %v1042_v5  ;;  %v1000_v37 = vmul.f32 %v936_v11, %v744_v15 }
 0x1c1   : > { %v816_v31 = vmul.f32 0.70710677, %v2833_v10  ;;  %v671_v33 = vpop.f32.mrb[51].mxu0  ;;  %v939_v35 = vadd.f32 1.0, %v2175_v25  ;;  %v2845_v14 = vadd.f32 %v669_v24, %v2644_v54  ;;  %v1001_v16 = vmul.f32 %v937_v17, %v745_v26 }
 0x1c2   : > { %v817_v12 = vmul.f32 0.70710677, %v2837_v18  ;;  %v1002_v22 = vmul.f32 %v938_v30, %v746_v29  ;;  %v2848_v19 = vadd.f32 %v671_v33, %v2646_v55  ;;  %v752_v13 = vmul.f32 0.5, %v2833_v10 }
 0x1c3   : > { %2184 = verf.f32 %v816_v31  ;;  %v1003_v36 = vmul.f32 %v939_v35, %v747_v34  ;;  %v818_v20 = vmul.f32 0.70710677, %v2845_v14  ;;  %v753_v26 = vmul.f32 0.5, %v2837_v18 }
 0x1c4   : > { %2186 = verf.f32 %v817_v12  ;;  %v819_v21 = vmul.f32 0.70710677, %v2848_v19  ;;  %v1044_v32 = vpack.c.bf16 %v1002_v22, %v1000_v37  ;;  %v754_v29 = vmul.f32 0.5, %v2845_v14 }
 0x1c5   : > { %v2177_v28 = vpop.eup %2176  ;;  %2188 = verf.f32 %v818_v20  ;;  %v1045_v39 = vpack.c.bf16 %v1003_v36, %v1001_v16  ;;  %v755_v34 = vmul.f32 0.5, %v2848_v19 }
 0x1c6   : > { %v2179_v23 = vpop.eup %2178  ;;  %v675_v40 = vpop.f32.mrb[52].mxu0  ;;  %v940_v27 = vadd.f32 1.0, %v2177_v28  ;;  %2190 = verf.f32 %v819_v21 }
 0x1c7   : > { %v2853_v41 = vadd.f32 %v675_v40, %v2644_v54  ;;  %v677_v42 = vpop.f32.mrb[53].mxu0  ;;  %v2181_v43 = vpop.eup %2180  ;;  %v941_v47 = vadd.f32 1.0, %v2179_v23  ;;  %1303 = vmatprep.mubr.bf16.mxu1 %v1045_v39 }
 0x1c8   : > { %v2857_v49 = vadd.f32 %v677_v42, %v2646_v55  ;;  %v679_v57 = vpop.f32.mrb[54].mxu0  ;;  %v2183_v58 = vpop.eup %2182  ;;  %v942_v62 = vadd.f32 1.0, %v2181_v43  ;;  %1304 = vmatmul.mubr.bf16.gmra.mrb[40].mxu1 %v1044_v32  ;;  %v1004_v4 = vmul.f32 %v940_v27, %v748_v45 }
 0x1c9   : > { %v820_v63 = vmul.f32 0.70710677, %v2853_v41  ;;  %v681_v0 = vpop.f32.mrb[55].mxu0  ;;  %v943_v2 = vadd.f32 1.0, %v2183_v58  ;;  %v2865_v44 = vadd.f32 %v679_v57, %v2644_v54  ;;  %v1005_v46 = vmul.f32 %v941_v47, %v749_v59 }
 0x1ca   : > { %v821_v38 = vmul.f32 0.70710677, %v2857_v49  ;;  %v1006_v6 = vmul.f32 %v942_v62, %v750_v61  ;;  %v2868_v50 = vadd.f32 %v681_v0, %v2646_v55  ;;  %v756_v43 = vmul.f32 0.5, %v2853_v41 }
 0x1cb   : > { %2192 = verf.f32 %v820_v63  ;;  %v1007_v48 = vmul.f32 %v943_v2, %v751_v1  ;;  %v822_v3 = vmul.f32 0.70710677, %v2865_v44  ;;  %v757_v59 = vmul.f32 0.5, %v2857_v49 }
 0x1cc   : > { %2194 = verf.f32 %v821_v38  ;;  %v823_v51 = vmul.f32 0.70710677, %v2868_v50  ;;  %v1046_v60 = vpack.c.bf16 %v1006_v6, %v1004_v4  ;;  %v758_v61 = vmul.f32 0.5, %v2865_v44 }
 0x1cd   : > { %v2185_v52 = vpop.eup %2184  ;;  %2196 = verf.f32 %v822_v3  ;;  %v1047_v56 = vpack.c.bf16 %v1007_v48, %v1005_v46  ;;  %v759_v1 = vmul.f32 0.5, %v2868_v50 }
 0x1ce   : > { %v2187_v53 = vpop.eup %2186  ;;  %v685_v5 = vpop.f32.mrb[56].mxu0  ;;  %v944_v9 = vadd.f32 1.0, %v2185_v52  ;;  %2198 = verf.f32 %v823_v51 }
 0x1cf   : > { %v2873_v8 = vadd.f32 %v685_v5, %v2644_v54  ;;  %v687_v11 = vpop.f32.mrb[57].mxu0  ;;  %v2189_v7 = vpop.eup %2188  ;;  %v945_v15 = vadd.f32 1.0, %v2187_v53  ;;  %1311 = vmatprep.mubr.bf16.mxu1 %v1047_v56 }
 0x1d0   : > { %v2877_v17 = vadd.f32 %v687_v11, %v2646_v55  ;;  %v689_v24 = vpop.f32.mrb[58].mxu0  ;;  %v2191_v25 = vpop.eup %2190  ;;  %v946_v30 = vadd.f32 1.0, %v2189_v7  ;;  %1312 = vmatmul.mubr.bf16.gmra.mrb[44].mxu1 %v1046_v60  ;;  %v1008_v37 = vmul.f32 %v944_v9, %v752_v13 }
 0x1d1   : > { %v824_v31 = vmul.f32 0.70710677, %v2873_v8  ;;  %v691_v33 = vpop.f32.mrb[59].mxu0  ;;  %v947_v35 = vadd.f32 1.0, %v2191_v25  ;;  %v690_v12 = vadd.f32 %v689_v24, %v2644_v54  ;;  %v1009_v18 = vmul.f32 %v945_v15, %v753_v26 }
 0x1d2   : > { %v825_v10 = vmul.f32 0.70710677, %v2877_v17  ;;  %v1010_v22 = vmul.f32 %v946_v30, %v754_v29  ;;  %v692_v16 = vadd.f32 %v691_v33, %v2646_v55  ;;  %v760_v9 = vmul.f32 0.5, %v2873_v8 }
 0x1d3   : > { %2200 = verf.f32 %v824_v31  ;;  %v1011_v36 = vmul.f32 %v947_v35, %v755_v34  ;;  %v826_v14 = vmul.f32 0.70710677, %v690_v12  ;;  %v762_v11 = vmul.f32 0.5, %v690_v12 }
 0x1d4   : > { %2202 = verf.f32 %v825_v10  ;;  %v827_v28 = vmul.f32 0.70710677, %v692_v16  ;;  %v1048_v21 = vpack.c.bf16 %v1010_v22, %v1008_v37  ;;  %v761_v7 = vmul.f32 0.5, %v2877_v17 }
 0x1d5   : > { %v2193_v20 = vpop.eup %2192  ;;  %2204 = verf.f32 %v826_v14  ;;  %v1049_v23 = vpack.c.bf16 %v1011_v36, %v1009_v18  ;;  %v763_v13 = vmul.f32 0.5, %v692_v16 }
 0x1d6   : > { %v2195_v32 = vpop.eup %2194  ;;  %v695_v19 = vpop.f32.mrb[60].mxu0  ;;  %v948_v40 = vadd.f32 1.0, %v2193_v20  ;;  %2206 = verf.f32 %v827_v28 }
 0x1d7   : > { %v696_v39 = vadd.f32 %v695_v19, %v2644_v54  ;;  %v697_v27 = vpop.f32.mrb[61].mxu0  ;;  %v2197_v42 = vpop.eup %2196  ;;  %v949_v45 = vadd.f32 1.0, %v2195_v32  ;;  %1319 = vmatprep.mubr.bf16.mxu1 %v1049_v23 }
 0x1d8   : > { %v698_v47 = vadd.f32 %v697_v27, %v2646_v55  ;;  %v699_v57 = vpop.f32.mrb[62].mxu0  ;;  %v2199_v58 = vpop.eup %2198  ;;  %v950_v62 = vadd.f32 1.0, %v2197_v42  ;;  %1320 = vmatmul.mubr.bf16.gmra.mrb[48].mxu1 %v1048_v21  ;;  %v1012_v4 = vmul.f32 %v948_v40, %v756_v43 }
 0x1d9   : > { %v828_v63 = vmul.f32 0.70710677, %v696_v39  ;;  %v701_v0 = vpop.f32.mrb[63].mxu0  ;;  %v951_v2 = vadd.f32 1.0, %v2199_v58  ;;  %v700_v41 = vadd.f32 %v699_v57, %v2644_v54  ;;  %v1013_v48 = vmul.f32 %v949_v45, %v757_v59 }
 0x1da   : > { %v829_v38 = vmul.f32 0.70710677, %v698_v47  ;;  %v1014_v6 = vmul.f32 %v950_v62, %v758_v61  ;;  %v702_v46 = vadd.f32 %v701_v0, %v2646_v55  ;;  %v764_v12 = vmul.f32 0.5, %v696_v39  ;;  %v2899_v39 = vld [vmem:[%s3008_s4] ss:$0 sm:$0xff] }
 0x1db   : > { %2208 = verf.f32 %v828_v63  ;;  %v1015_v3 = vmul.f32 %v951_v2, %v759_v1  ;;  %v830_v49 = vmul.f32 0.70710677, %v700_v41  ;;  %v766_v22 = vmul.f32 0.5, %v700_v41 }
 0x1dc   : > { %2210 = verf.f32 %v829_v38  ;;  %v831_v52 = vmul.f32 0.70710677, %v702_v46  ;;  %v1050_v51 = vpack.c.bf16 %v1014_v6, %v1012_v4  ;;  %v765_v17 = vmul.f32 0.5, %v698_v47 }
 0x1dd   : > { %v2201_v44 = vpop.eup %2200  ;;  %2212 = verf.f32 %v830_v49  ;;  %v1051_v53 = vpack.c.bf16 %v1015_v3, %v1013_v48  ;;  %v767_v16 = vmul.f32 0.5, %v702_v46 }
 0x1de   : > { %v2203_v60 = vpop.eup %2202  ;;  %v952_v50 = vadd.f32 1.0, %v2201_v44  ;;  %2214 = verf.f32 %v831_v52 }
 0x1df   : > { %v2205_v5 = vpop.eup %2204  ;;  %v953_v56 = vadd.f32 1.0, %v2203_v60  ;;  %1327 = vmatprep.mubr.bf16.mxu1 %v1051_v53 }
 0x1e0   : > { %v2207_v54 = vpop.eup %2206  ;;  %v954_v55 = vadd.f32 1.0, %v2205_v5  ;;  %1328 = vmatmul.mubr.bf16.gmra.mrb[52].mxu1 %v1050_v51  ;;  %v1016_v24 = vmul.f32 %v952_v50, %v760_v9 }
 0x1e1   : > { %v955_v15 = vadd.f32 1.0, %v2207_v54  ;;  %v1017_v26 = vmul.f32 %v953_v56, %v761_v7 }
 0x1e2   : > { %v1018_v25 = vmul.f32 %v954_v55, %v762_v11 }
 0x1e3   : > { %v1019_v29 = vmul.f32 %v955_v15, %v763_v13 }
 0x1e4   : > { %v1052_v31 = vpack.c.bf16 %v1018_v25, %v1016_v24 }
 0x1e5   : > { %v2209_v30 = vpop.eup %2208  ;;  %v1053_v34 = vpack.c.bf16 %v1019_v29, %v1017_v26 }
 0x1e6   : > { %v2211_v33 = vpop.eup %2210  ;;  %v956_v35 = vadd.f32 1.0, %v2209_v30 }
 0x1e7   : > { %v2213_v10 = vpop.eup %2212  ;;  %v957_v37 = vadd.f32 1.0, %v2211_v33  ;;  %1335 = vmatprep.mubr.bf16.mxu1 %v1053_v34 }
 0x1e8   : > { %v2215_v8 = vpop.eup %2214  ;;  %v958_v18 = vadd.f32 1.0, %v2213_v10  ;;  %1336 = vmatmul.mubr.bf16.gmra.mrb[56].mxu1 %v1052_v31  ;;  %v1020_v14 = vmul.f32 %v956_v35, %v764_v12 }
 0x1e9   : > { %v959_v36 = vadd.f32 1.0, %v2215_v8  ;;  %v1021_v28 = vmul.f32 %v957_v37, %v765_v17 }
 0x1ea   : > { %v1022_v20 = vmul.f32 %v958_v18, %v766_v22 }
 0x1eb   : > { %v1023_v21 = vmul.f32 %v959_v36, %v767_v16 }
 0x1ec   : > { %v1054_v32 = vpack.c.bf16 %v1022_v20, %v1020_v14 }
 0x1ed   : > { %v1055_v19 = vpack.c.bf16 %v1023_v21, %v1021_v28 }
 0x1ef   : > { %1343 = vmatprep.mubr.bf16.mxu1 %v1055_v19 }
 0x1f0   : > { %1344 = vmatmul.mubr.bf16.gmra.mrb[60].mxu1 %v1054_v32 }
 0x24b   : > { %v1862_v23 = vpop.f32.mrb[0].mxu1 }
 0x24c   : > { %v1863_v40 = vpop.f32.mrb[1].mxu1 }
 0x24d   : > { %v1864_v27 = vadd.f32 %v1863_v40, %v1862_v23  ;;  %v1865_v42 = vpop.f32.mrb[2].mxu1 }
 0x24e   : > { %v1866_v43 = vpop.f32.mrb[3].mxu1 }
 0x24f   : > { %v1867_v45 = vadd.f32 %v1866_v43, %v1865_v42  ;;  %v1226_v47 = vadd.f32 %v1864_v27, %v2899_v39 }
 0x251   : > { %v1229_v57 = vadd.f32 %v1867_v45, %v2899_v39 }
 0x253   : > { %v1754_v58 = vpack.c.bf16 %v1229_v57, %v1226_v47  ;;  %v1868_v59 = vpop.f32.mrb[4].mxu1 }
 0x254   : > { %v1869_v61 = vpop.f32.mrb[5].mxu1 }
 0x255   : > { %1755 = vst [vmem:[%s2905_s10] sm:$0xff] %v1754_v58   ;;  %v1870_v62 = vadd.f32 %v1869_v61, %v1868_v59  ;;  %v1871_v63 = vpop.f32.mrb[6].mxu1 }
 0x256   : > { %v1872_v0 = vpop.f32.mrb[7].mxu1 }
 0x257   : > { %v1873_v1 = vadd.f32 %v1872_v0, %v1871_v63  ;;  %v1234_v2 = vadd.f32 %v1870_v62, %v2899_v39 }
 0x259   : > { %v1237_v38 = vadd.f32 %v1873_v1, %v2899_v39 }
 0x25b   : > { %v1759_v41 = vpack.c.bf16 %v1237_v38, %v1234_v2  ;;  %v1874_v4 = vpop.f32.mrb[8].mxu1 }
 0x25c   : > { %v1875_v6 = vpop.f32.mrb[9].mxu1 }
 0x25d   : > { %1831 = vst [vmem:[%s2905_s10 + $0x8] sm:$0xff] %v1759_v41   ;;  %v1876_v46 = vadd.f32 %v1875_v6, %v1874_v4  ;;  %v1877_v48 = vpop.f32.mrb[10].mxu1 }
 0x25e   : > { %v1878_v3 = vpop.f32.mrb[11].mxu1 }
 0x25f   : > { %v1879_v49 = vadd.f32 %v1878_v3, %v1877_v48  ;;  %v1242_v44 = vadd.f32 %v1876_v46, %v2899_v39 }
 0x261   : > { %v1245_v52 = vadd.f32 %v1879_v49, %v2899_v39 }
 0x263   : > { %v1764_v51 = vpack.c.bf16 %v1245_v52, %v1242_v44  ;;  %v1880_v60 = vpop.f32.mrb[12].mxu1 }
 0x264   : > { %v1881_v53 = vpop.f32.mrb[13].mxu1 }
 0x265   : > { %1832 = vst [vmem:[%s2905_s10 + $0x10] sm:$0xff] %v1764_v51   ;;  %v1882_v50 = vadd.f32 %v1881_v53, %v1880_v60  ;;  %v1883_v5 = vpop.f32.mrb[14].mxu1 }
 0x266   : > { %v1884_v56 = vpop.f32.mrb[15].mxu1 }
 0x267   : > { %v1885_v54 = vadd.f32 %v1884_v56, %v1883_v5  ;;  %v1250_v9 = vadd.f32 %v1882_v50, %v2899_v39 }
 0x269   : > { %v1253_v11 = vadd.f32 %v1885_v54, %v2899_v39 }
 0x26b   : > { %v1769_v55 = vpack.c.bf16 %v1253_v11, %v1250_v9  ;;  %v1886_v7 = vpop.f32.mrb[16].mxu1 }
 0x26c   : > { %v1887_v13 = vpop.f32.mrb[17].mxu1 }
 0x26d   : > { %1833 = vst [vmem:[%s2905_s10 + $0x18] sm:$0xff] %v1769_v55   ;;  %v1888_v15 = vadd.f32 %v1887_v13, %v1886_v7  ;;  %v1889_v24 = vpop.f32.mrb[18].mxu1 }
 0x26e   : > { %v1890_v25 = vpop.f32.mrb[19].mxu1 }
 0x26f   : > { %v1891_v26 = vadd.f32 %v1890_v25, %v1889_v24  ;;  %v1258_v29 = vadd.f32 %v1888_v15, %v2899_v39 }
 0x271   : > { %v1261_v30 = vadd.f32 %v1891_v26, %v2899_v39 }
 0x273   : > { %v1774_v31 = vpack.c.bf16 %v1261_v30, %v1258_v29  ;;  %v1892_v33 = vpop.f32.mrb[20].mxu1 }
 0x274   : > { %v1893_v34 = vpop.f32.mrb[21].mxu1 }
 0x275   : > { %1834 = vst [vmem:[%s2905_s10 + $0x20] sm:$0xff] %v1774_v31   ;;  %v1894_v35 = vadd.f32 %v1893_v34, %v1892_v33  ;;  %v1895_v10 = vpop.f32.mrb[22].mxu1 }
 0x276   : > { %v1896_v37 = vpop.f32.mrb[23].mxu1 }
 0x277   : > { %v1897_v8 = vadd.f32 %v1896_v37, %v1895_v10  ;;  %v1266_v12 = vadd.f32 %v1894_v35, %v2899_v39 }
 0x279   : > { %v1269_v22 = vadd.f32 %v1897_v8, %v2899_v39 }
 0x27b   : > { %v1779_v18 = vpack.c.bf16 %v1269_v22, %v1266_v12  ;;  %v1898_v17 = vpop.f32.mrb[24].mxu1 }
 0x27c   : > { %v1899_v16 = vpop.f32.mrb[25].mxu1 }
 0x27d   : > { %1835 = vst [vmem:[%s2905_s10 + $0x28] sm:$0xff] %v1779_v18   ;;  %v1900_v36 = vadd.f32 %v1899_v16, %v1898_v17  ;;  %v1901_v14 = vpop.f32.mrb[26].mxu1 }
 0x27e   : > { %v1902_v20 = vpop.f32.mrb[27].mxu1 }
 0x27f   : > { %v1903_v28 = vadd.f32 %v1902_v20, %v1901_v14  ;;  %v1274_v21 = vadd.f32 %v1900_v36, %v2899_v39 }
 0x281   : > { %v1277_v32 = vadd.f32 %v1903_v28, %v2899_v39 }
 0x283   : > { %v1784_v19 = vpack.c.bf16 %v1277_v32, %v1274_v21  ;;  %v1904_v23 = vpop.f32.mrb[28].mxu1 }
 0x284   : > { %v1905_v40 = vpop.f32.mrb[29].mxu1 }
 0x285   : > { %1836 = vst [vmem:[%s2905_s10 + $0x30] sm:$0xff] %v1784_v19   ;;  %v1906_v27 = vadd.f32 %v1905_v40, %v1904_v23  ;;  %v1907_v42 = vpop.f32.mrb[30].mxu1 }
 0x286   : > { %v1908_v43 = vpop.f32.mrb[31].mxu1 }
 0x287   : > { %v1909_v45 = vadd.f32 %v1908_v43, %v1907_v42  ;;  %v1282_v47 = vadd.f32 %v1906_v27, %v2899_v39 }
 0x289   : > { %v1285_v57 = vadd.f32 %v1909_v45, %v2899_v39 }
 0x28b   : > { %v1789_v58 = vpack.c.bf16 %v1285_v57, %v1282_v47  ;;  %v1910_v59 = vpop.f32.mrb[32].mxu1 }
 0x28c   : > { %v1911_v61 = vpop.f32.mrb[33].mxu1 }
 0x28d   : > { %1837 = vst [vmem:[%s2905_s10 + $0x38] sm:$0xff] %v1789_v58   ;;  %v1912_v62 = vadd.f32 %v1911_v61, %v1910_v59  ;;  %v1913_v63 = vpop.f32.mrb[34].mxu1 }
 0x28e   : > { %v1914_v0 = vpop.f32.mrb[35].mxu1 }
 0x28f   : > { %v1915_v1 = vadd.f32 %v1914_v0, %v1913_v63  ;;  %v1290_v2 = vadd.f32 %v1912_v62, %v2899_v39 }
 0x291   : > { %v1293_v38 = vadd.f32 %v1915_v1, %v2899_v39 }
 0x293   : > { %v1794_v41 = vpack.c.bf16 %v1293_v38, %v1290_v2  ;;  %v1916_v4 = vpop.f32.mrb[36].mxu1 }
 0x294   : > { %v1917_v6 = vpop.f32.mrb[37].mxu1 }
 0x295   : > { %1838 = vst [vmem:[%s2905_s10 + $0x40] sm:$0xff] %v1794_v41   ;;  %v1918_v46 = vadd.f32 %v1917_v6, %v1916_v4  ;;  %v1919_v48 = vpop.f32.mrb[38].mxu1 }
 0x296   : > { %v1920_v3 = vpop.f32.mrb[39].mxu1 }
 0x297   : > { %v1921_v49 = vadd.f32 %v1920_v3, %v1919_v48  ;;  %v1298_v44 = vadd.f32 %v1918_v46, %v2899_v39 }
 0x299   : > { %v1301_v52 = vadd.f32 %v1921_v49, %v2899_v39 }
 0x29b   : > { %v1799_v51 = vpack.c.bf16 %v1301_v52, %v1298_v44  ;;  %v1922_v60 = vpop.f32.mrb[40].mxu1 }
 0x29c   : > { %v1923_v53 = vpop.f32.mrb[41].mxu1 }
 0x29d   : > { %1839 = vst [vmem:[%s2905_s10 + $0x48] sm:$0xff] %v1799_v51   ;;  %v1924_v50 = vadd.f32 %v1923_v53, %v1922_v60  ;;  %v1925_v5 = vpop.f32.mrb[42].mxu1 }
 0x29e   : > { %v1926_v56 = vpop.f32.mrb[43].mxu1 }
 0x29f   : > { %v1927_v54 = vadd.f32 %v1926_v56, %v1925_v5  ;;  %v1306_v9 = vadd.f32 %v1924_v50, %v2899_v39 }
 0x2a1   : > { %v1309_v11 = vadd.f32 %v1927_v54, %v2899_v39 }
 0x2a3   : > { %v1804_v55 = vpack.c.bf16 %v1309_v11, %v1306_v9  ;;  %v1928_v7 = vpop.f32.mrb[44].mxu1 }
 0x2a4   : > { %v1929_v13 = vpop.f32.mrb[45].mxu1 }
 0x2a5   : > { %1840 = vst [vmem:[%s2905_s10 + $0x50] sm:$0xff] %v1804_v55   ;;  %v1930_v15 = vadd.f32 %v1929_v13, %v1928_v7  ;;  %v1931_v24 = vpop.f32.mrb[46].mxu1 }
 0x2a6   : > { %v1932_v25 = vpop.f32.mrb[47].mxu1 }
 0x2a7   : > { %v1933_v26 = vadd.f32 %v1932_v25, %v1931_v24  ;;  %v1314_v29 = vadd.f32 %v1930_v15, %v2899_v39 }
 0x2a9   : > { %v1317_v30 = vadd.f32 %v1933_v26, %v2899_v39 }
 0x2ab   : > { %v1809_v31 = vpack.c.bf16 %v1317_v30, %v1314_v29  ;;  %v1934_v33 = vpop.f32.mrb[48].mxu1 }
 0x2ac   : > { %v1935_v34 = vpop.f32.mrb[49].mxu1 }
 0x2ad   : > { %1841 = vst [vmem:[%s2905_s10 + $0x58] sm:$0xff] %v1809_v31   ;;  %v1936_v35 = vadd.f32 %v1935_v34, %v1934_v33  ;;  %v1937_v10 = vpop.f32.mrb[50].mxu1 }
 0x2ae   : > { %v1938_v37 = vpop.f32.mrb[51].mxu1 }
 0x2af   : > { %v1939_v8 = vadd.f32 %v1938_v37, %v1937_v10  ;;  %v1322_v12 = vadd.f32 %v1936_v35, %v2899_v39 }
 0x2b1   : > { %v1325_v22 = vadd.f32 %v1939_v8, %v2899_v39 }
 0x2b3   : > { %v1814_v18 = vpack.c.bf16 %v1325_v22, %v1322_v12  ;;  %v1940_v17 = vpop.f32.mrb[52].mxu1 }
 0x2b4   : > { %v1941_v16 = vpop.f32.mrb[53].mxu1 }
 0x2b5   : > { %1842 = vst [vmem:[%s2905_s10 + $0x60] sm:$0xff] %v1814_v18   ;;  %v1942_v36 = vadd.f32 %v1941_v16, %v1940_v17  ;;  %v1943_v14 = vpop.f32.mrb[54].mxu1 }
 0x2b6   : > { %v1944_v20 = vpop.f32.mrb[55].mxu1 }
 0x2b7   : > { %v1945_v28 = vadd.f32 %v1944_v20, %v1943_v14  ;;  %v1330_v21 = vadd.f32 %v1942_v36, %v2899_v39 }
 0x2b9   : > { %v1333_v32 = vadd.f32 %v1945_v28, %v2899_v39 }
 0x2bb   : > { %v1819_v19 = vpack.c.bf16 %v1333_v32, %v1330_v21  ;;  %v1946_v23 = vpop.f32.mrb[56].mxu1 }
 0x2bc   : > { %v1947_v40 = vpop.f32.mrb[57].mxu1 }
 0x2bd   : > { %1843 = vst [vmem:[%s2905_s10 + $0x68] sm:$0xff] %v1819_v19   ;;  %v1948_v27 = vadd.f32 %v1947_v40, %v1946_v23  ;;  %v1949_v42 = vpop.f32.mrb[58].mxu1 }
 0x2be   : > { %v1950_v43 = vpop.f32.mrb[59].mxu1 }
 0x2bf   : > { %v1951_v45 = vadd.f32 %v1950_v43, %v1949_v42  ;;  %v1338_v47 = vadd.f32 %v1948_v27, %v2899_v39 }
 0x2c1   : > { %v1341_v57 = vadd.f32 %v1951_v45, %v2899_v39 }
 0x2c3   : > { %v1824_v58 = vpack.c.bf16 %v1341_v57, %v1338_v47  ;;  %v1952_v59 = vpop.f32.mrb[60].mxu1 }
 0x2c4   : > { %v1953_v61 = vpop.f32.mrb[61].mxu1 }
 0x2c5   : > { %1844 = vst [vmem:[%s2905_s10 + $0x70] sm:$0xff] %v1824_v58   ;;  %v1954_v62 = vadd.f32 %v1953_v61, %v1952_v59  ;;  %v1955_v63 = vpop.f32.mrb[62].mxu1 }
 0x2c6   : > { %v1956_v0 = vpop.f32.mrb[63].mxu1 }
 0x2c7   : > { %v1957_v1 = vadd.f32 %v1956_v0, %v1955_v63  ;;  %v1346_v2 = vadd.f32 %v1954_v62, %v2899_v39 }
 0x2c9   : > { %v1349_v38 = vadd.f32 %v1957_v1, %v2899_v39 }
 0x2cb   : > { %v1829_v41 = vpack.c.bf16 %v1349_v38, %v1346_v2 }
 0x2cd   : > { %1845 = vst [vmem:[%s2905_s10 + $0x78] sm:$0xff] %v1829_v41  }
 0x2ce   : > { %2315 = shalt.err (!%p2312_p2)
}
 0x2cf   : > { %s2316_s14 = scalar_lea.hbm %s2957_s11, 2048  ;;  %s2320_s12 = scalar_lea.hbm %s3009_s5, 4096 }
 0x2d0   : > { %p2317_p13 = scmp.ne.s32.totalorder %s2957_s11, %s2316_s14  ;;  %p2321_p4 = scmp.lt.u32.totalorder %s2957_s11, %s3009_s5 }
 0x2d1   : > { %p2322_p7 = scmp.lt.u32.totalorder %s2320_s12, %s2316_s14  ;;  %p2324_p11 = scmp.lt.u32.totalorder %s2316_s14, %s2957_s11 }
 0x2d2   : > { %p2318_p6 = pnand %p2317_p13, %p3023_p0 }
 0x2d3   : > { %p2323_p8 = por %p2322_p7, %p2321_p4 }
 0x2d4   : > { %p2319_p10 = pneg %p2318_p6 }
 0x2d5   : > { %p2325_p1 = por %p2324_p11, %p2323_p8 }
 0x2d7   : > { %p2326_p3 = pnand %p2325_p1, %p2319_p10 }
 0x2d9   : > { %2329 = shalt.err (!%p2326_p3)
}
 0x2da   : > { %s2383_s28 = smov 64   ;;  %s2384_s9 = smov 4  }
 0x2db   : > { %1968 = dma.vmem_to_hbm [thread:$0]  (%p3023_p0), %s2959_s15, 2048, %s2957_s11, %s1513_s23, %s2383_s28, %s2383_s28, %s2384_s9  }
 0x2dc PF: > { %s1541_s30 = sand.u32 1, %s2360_s18   ;;  %p3024_p5 = scmp.ne.s32.totalorder %s3014_s25, 0 }
 0x2dd   : > { %p3025_p9 = scmp.ge.s32.totalorder %s2372_s21, 2  ;;  %s1542_s7 = scalar_lea.sflag [#allocation4], %s1541_s30 }
 0x2df   : > { %p1982_p12 = pnand %p3025_p9, %p3024_p5 }
 0x2e1   : > { %2355 = dma.done.wait (!%p1982_p12), %s1542_s7, 2048  }
 0x2e2   : > { %2357 = vsyncadd (!%p1982_p12), %s1542_s7, 4294965248  ;;  %p19_p2 = scmp.ge.s32.totalorder %s2528_s16, 4   ;;  %s3026_s18 = smov %s2364_s19 }
 0x2e3   : > { %s3027_s19 = smov %s2368_s20  ;;  %s3028_s20 = smov %s2537_s27 }
 0x2e4   : > { %s3029_s21 = smov %s2528_s16  ;;  %21 = sbr.rel (!%p19_p2) target bundleno = 6 (0x6), region = 93 }
 0x2eb   :  { %1547 = vsyncpa [#allocation3], 1 }
 0x2ec   :  { %1549 = vsyncpa [#allocation3 + $0x1], 1 }
 0x2ed   :  { %1550 = vsyncpa [#allocation6], 1 }
 0x2ee   :  { %1551 = vsyncpa [#allocation4], 1 }
 0x2ef   :  { %1553 = vsyncpa [#allocation4 + $0x1], 1 }

</bundles_post_ra>
